<compile_context>
chip_gen: v5e
topology: v5e:2x2
jax: 0.10.0
libtpu: 0.0.40
codegen_flags: <defaults>
</compile_context>

<pallas_src>
import functools

import jax
import jax.numpy as jnp
from jax.experimental import pallas as pl
from jax.experimental.pallas import tpu as pltpu


def dqn_mlp_kernel(x_ref,
                   w1_ref, b1_ref,
                   w2_ref, b2_ref,
                   w3_ref, b3_ref,
                   w4_ref, b4_ref,
                   w5_ref, b5_ref,
                   o_ref):
    """Fused forward pass for one batch tile.  Weights are VMEM-resident bf16."""
    # Cast point for the first matmul (x arrives as f32).
    h = x_ref[...].astype(jnp.bfloat16)

    # layers 1..4: bf16 matmul with f32 accumulation, f32 bias + ReLU,
    # then recast to bf16 for the next MXU pass.
    h = jnp.dot(h, w1_ref[...], preferred_element_type=jnp.float32) + b1_ref[...]
    h = jnp.maximum(h, 0.0).astype(jnp.bfloat16)

    h = jnp.dot(h, w2_ref[...], preferred_element_type=jnp.float32) + b2_ref[...]
    h = jnp.maximum(h, 0.0).astype(jnp.bfloat16)

    h = jnp.dot(h, w3_ref[...], preferred_element_type=jnp.float32) + b3_ref[...]
    h = jnp.maximum(h, 0.0).astype(jnp.bfloat16)

    h = jnp.dot(h, w4_ref[...], preferred_element_type=jnp.float32) + b4_ref[...]
    h = jnp.maximum(h, 0.0).astype(jnp.bfloat16)

    # layer 5: matmul + bias, no activation
    out = jnp.dot(h, w5_ref[...], preferred_element_type=jnp.float32) + b5_ref[...]
    o_ref[...] = out.astype(o_ref.dtype)


@functools.partial(jax.jit, static_argnames=("tb",))
def dqn_dnn_forward(x, params, *, tb=256):
    """x: [B, in_features] float32.  params: list of (W[in,out] bf16, b[1,out] f32)."""
    B, in_features = x.shape
    (w1, b1), (w2, b2), (w3, b3), (w4, b4), (w5, b5) = params
    outputs = w5.shape[1]

    # Batch tile: at most B rows; must be a multiple of 8 or equal to B.
    tb = min(tb, B)
    grid = (pl.cdiv(B, tb),)

    def resident_spec(shape):
        # Full-array block, constant index_map -> loaded once, stays in VMEM.
        return pl.BlockSpec(shape, lambda i: tuple(0 for _ in shape))

    in_specs = [pl.BlockSpec((tb, in_features), lambda i: (i, 0))]
    for w, b in params:
        in_specs.append(resident_spec(w.shape))
        in_specs.append(resident_spec(b.shape))

    out_spec = pl.BlockSpec((tb, outputs), lambda i: (i, 0))

    return pl.pallas_call(
        dqn_mlp_kernel,
        out_shape=jax.ShapeDtypeStruct((B, outputs), jnp.float32),
        grid=grid,
        in_specs=in_specs,
        out_specs=out_spec,
        compiler_params=pltpu.CompilerParams(
            dimension_semantics=("parallel",),
            vmem_limit_bytes=32 << 20,
        ),
    )(x, w1, b1, w2, b2, w3, b3, w4, b4, w5, b5)


def init_params(key, in_features, outputs):
    """Mirrors DQN_DNN.init_weights() (normal_ on W and b).

    PyTorch stores W as [out, in]; we keep the transposed [in, out] layout so
    the kernel computes y = x @ W + b.  Weights are kept in bf16 (MXU-native),
    biases in f32.
    """
    sizes = [(in_features, 1024), (1024, 512), (512, 256), (256, 128), (128, outputs)]
    params = []
    for (fan_in, fan_out) in sizes:
        key, kw, kb = jax.random.split(key, 3)
        w = jax.random.normal(kw, (fan_in, fan_out), dtype=jnp.float32).astype(jnp.bfloat16)
        b = jax.random.normal(kb, (1, fan_out), dtype=jnp.float32)
        params.append((w, b))
    return params


def reference_forward(x, params):
    """Full-precision (f32) reference on the same (bf16-rounded) weights."""
    h = x
    for i, (w, b) in enumerate(params):
        h = h @ w.astype(jnp.float32) + b
        if i < len(params) - 1:
            h = jnp.maximum(h, 0.0)
    return h


if __name__ == "__main__":
    key = jax.random.PRNGKey(0)
    batch = 16          # small demo batch; tiled with tb=8 to exercise the grid
    in_features = 64
    outputs = 8

    key, kx = jax.random.split(key)
    x = jax.random.normal(kx, (batch, in_features), dtype=jnp.float32)

    params = init_params(key, in_features, outputs)

    out = dqn_dnn_forward(x, params, tb=8)
    out = jax.block_until_ready(out)

    ref = reference_forward(x, params)
    assert out.shape == (batch, outputs)

    # bf16 matmul inputs + f32 accumulation: compare with a scale-normalized error.
    err = jnp.max(jnp.abs(out - ref)) / (jnp.max(jnp.abs(ref)) + 1e-6)
    assert err < 2e-2, f"Pallas output mismatch vs reference (normalized err={err})"

    print("KERNEL_OK")
</pallas_src>

<mosaic_0001>
module attributes {stable_mosaic.version = 11 : i64} {
  func.func @dqn_mlp_kernel(%arg0: i32, %arg1: memref<8x64xf32, #tpu.memory_space<vmem>>, %arg2: memref<64x1024xbf16, #tpu.memory_space<vmem>>, %arg3: memref<1x1024xf32, #tpu.memory_space<vmem>>, %arg4: memref<1024x512xbf16, #tpu.memory_space<vmem>>, %arg5: memref<1x512xf32, #tpu.memory_space<vmem>>, %arg6: memref<512x256xbf16, #tpu.memory_space<vmem>>, %arg7: memref<1x256xf32, #tpu.memory_space<vmem>>, %arg8: memref<256x128xbf16, #tpu.memory_space<vmem>>, %arg9: memref<1x128xf32, #tpu.memory_space<vmem>>, %arg10: memref<128x8xbf16, #tpu.memory_space<vmem>>, %arg11: memref<1x8xf32, #tpu.memory_space<vmem>>, %arg12: memref<8x8xf32, #tpu.memory_space<vmem>>) attributes {dimension_semantics = [#tpu.dimension_semantics<parallel>], iteration_bounds = array<i64: 2>, scalar_prefetch = 0 : i64, scratch_operands = 0 : i64, tpu.core_type = #tpu.core_type<tc>, window_params = [{transform_indices = @transform_0, window_bounds = array<i64: 8, 64>}, {pipeline_mode = #tpu.pipeline_mode<synchronous>, transform_indices = @transform_1, window_bounds = array<i64: 64, 1024>}, {pipeline_mode = #tpu.pipeline_mode<synchronous>, transform_indices = @transform_2, window_bounds = array<i64: 1, 1024>}, {pipeline_mode = #tpu.pipeline_mode<synchronous>, transform_indices = @transform_3, window_bounds = array<i64: 1024, 512>}, {pipeline_mode = #tpu.pipeline_mode<synchronous>, transform_indices = @transform_4, window_bounds = array<i64: 1, 512>}, {pipeline_mode = #tpu.pipeline_mode<synchronous>, transform_indices = @transform_5, window_bounds = array<i64: 512, 256>}, {pipeline_mode = #tpu.pipeline_mode<synchronous>, transform_indices = @transform_6, window_bounds = array<i64: 1, 256>}, {pipeline_mode = #tpu.pipeline_mode<synchronous>, transform_indices = @transform_7, window_bounds = array<i64: 256, 128>}, {pipeline_mode = #tpu.pipeline_mode<synchronous>, transform_indices = @transform_8, window_bounds = array<i64: 1, 128>}, {pipeline_mode = #tpu.pipeline_mode<synchronous>, transform_indices = @transform_9, window_bounds = array<i64: 128, 8>}, {pipeline_mode = #tpu.pipeline_mode<synchronous>, transform_indices = @transform_10, window_bounds = array<i64: 1, 8>}, {transform_indices = @transform_11, window_bounds = array<i64: 8, 8>}]} {
    %c0 = arith.constant 0 : index
    %c0_0 = arith.constant 0 : index
    %0 = vector.load %arg1[%c0, %c0_0] : memref<8x64xf32, #tpu.memory_space<vmem>>, vector<8x64xf32>
    %1 = arith.truncf %0 : vector<8x64xf32> to vector<8x64xbf16>
    %c0_1 = arith.constant 0 : index
    %c0_2 = arith.constant 0 : index
    %2 = vector.load %arg2[%c0_1, %c0_2] : memref<64x1024xbf16, #tpu.memory_space<vmem>>, vector<64x1024xbf16>
    %cst = arith.constant dense<0.000000e+00> : vector<8x1024xf32>
    %3 = tpu.matmul %1, %2, %cst {dimension_numbers = #tpu.dot_dimension_numbers<[1], [0], [0], [1], [0, 0, 1, 1], [], []>} : vector<8x64xbf16>, vector<64x1024xbf16>, vector<8x1024xf32> -> vector<8x1024xf32>
    %c0_3 = arith.constant 0 : index
    %c0_4 = arith.constant 0 : index
    %4 = vector.load %arg3[%c0_3, %c0_4] : memref<1x1024xf32, #tpu.memory_space<vmem>>, vector<1x1024xf32>
    %5 = vector.broadcast %4 : vector<1x1024xf32> to vector<8x1024xf32>
    %6 = arith.addf %3, %5 : vector<8x1024xf32>
    %cst_5 = arith.constant 0.000000e+00 : f32
    %7 = vector.broadcast %cst_5 : f32 to vector<8x1024xf32>
    %8 = arith.maximumf %6, %7 : vector<8x1024xf32>
    %9 = arith.truncf %8 : vector<8x1024xf32> to vector<8x1024xbf16>
    %c0_6 = arith.constant 0 : index
    %c0_7 = arith.constant 0 : index
    %10 = vector.load %arg4[%c0_6, %c0_7] : memref<1024x512xbf16, #tpu.memory_space<vmem>>, vector<1024x512xbf16>
    %cst_8 = arith.constant dense<0.000000e+00> : vector<8x512xf32>
    %11 = tpu.matmul %9, %10, %cst_8 {dimension_numbers = #tpu.dot_dimension_numbers<[1], [0], [0], [1], [0, 0, 1, 1], [], []>} : vector<8x1024xbf16>, vector<1024x512xbf16>, vector<8x512xf32> -> vector<8x512xf32>
    %c0_9 = arith.constant 0 : index
    %c0_10 = arith.constant 0 : index
    %12 = vector.load %arg5[%c0_9, %c0_10] : memref<1x512xf32, #tpu.memory_space<vmem>>, vector<1x512xf32>
    %13 = vector.broadcast %12 : vector<1x512xf32> to vector<8x512xf32>
    %14 = arith.addf %11, %13 : vector<8x512xf32>
    %cst_11 = arith.constant 0.000000e+00 : f32
    %15 = vector.broadcast %cst_11 : f32 to vector<8x512xf32>
    %16 = arith.maximumf %14, %15 : vector<8x512xf32>
    %17 = arith.truncf %16 : vector<8x512xf32> to vector<8x512xbf16>
    %c0_12 = arith.constant 0 : index
    %c0_13 = arith.constant 0 : index
    %18 = vector.load %arg6[%c0_12, %c0_13] : memref<512x256xbf16, #tpu.memory_space<vmem>>, vector<512x256xbf16>
    %cst_14 = arith.constant dense<0.000000e+00> : vector<8x256xf32>
    %19 = tpu.matmul %17, %18, %cst_14 {dimension_numbers = #tpu.dot_dimension_numbers<[1], [0], [0], [1], [0, 0, 1, 1], [], []>} : vector<8x512xbf16>, vector<512x256xbf16>, vector<8x256xf32> -> vector<8x256xf32>
    %c0_15 = arith.constant 0 : index
    %c0_16 = arith.constant 0 : index
    %20 = vector.load %arg7[%c0_15, %c0_16] : memref<1x256xf32, #tpu.memory_space<vmem>>, vector<1x256xf32>
    %21 = vector.broadcast %20 : vector<1x256xf32> to vector<8x256xf32>
    %22 = arith.addf %19, %21 : vector<8x256xf32>
    %cst_17 = arith.constant 0.000000e+00 : f32
    %23 = vector.broadcast %cst_17 : f32 to vector<8x256xf32>
    %24 = arith.maximumf %22, %23 : vector<8x256xf32>
    %25 = arith.truncf %24 : vector<8x256xf32> to vector<8x256xbf16>
    %c0_18 = arith.constant 0 : index
    %c0_19 = arith.constant 0 : index
    %26 = vector.load %arg8[%c0_18, %c0_19] : memref<256x128xbf16, #tpu.memory_space<vmem>>, vector<256x128xbf16>
    %cst_20 = arith.constant dense<0.000000e+00> : vector<8x128xf32>
    %27 = tpu.matmul %25, %26, %cst_20 {dimension_numbers = #tpu.dot_dimension_numbers<[1], [0], [0], [1], [0, 0, 1, 1], [], []>} : vector<8x256xbf16>, vector<256x128xbf16>, vector<8x128xf32> -> vector<8x128xf32>
    %c0_21 = arith.constant 0 : index
    %c0_22 = arith.constant 0 : index
    %28 = vector.load %arg9[%c0_21, %c0_22] : memref<1x128xf32, #tpu.memory_space<vmem>>, vector<1x128xf32>
    %29 = vector.broadcast %28 : vector<1x128xf32> to vector<8x128xf32>
    %30 = arith.addf %27, %29 : vector<8x128xf32>
    %cst_23 = arith.constant 0.000000e+00 : f32
    %31 = vector.broadcast %cst_23 : f32 to vector<8x128xf32>
    %32 = arith.maximumf %30, %31 : vector<8x128xf32>
    %33 = arith.truncf %32 : vector<8x128xf32> to vector<8x128xbf16>
    %c0_24 = arith.constant 0 : index
    %c0_25 = arith.constant 0 : index
    %34 = vector.load %arg10[%c0_24, %c0_25] : memref<128x8xbf16, #tpu.memory_space<vmem>>, vector<128x8xbf16>
    %cst_26 = arith.constant dense<0.000000e+00> : vector<8x8xf32>
    %35 = tpu.matmul %33, %34, %cst_26 {dimension_numbers = #tpu.dot_dimension_numbers<[1], [0], [0], [1], [0, 0, 1, 1], [], []>} : vector<8x128xbf16>, vector<128x8xbf16>, vector<8x8xf32> -> vector<8x8xf32>
    %c0_27 = arith.constant 0 : index
    %c0_28 = arith.constant 0 : index
    %36 = vector.load %arg11[%c0_27, %c0_28] : memref<1x8xf32, #tpu.memory_space<vmem>>, vector<1x8xf32>
    %37 = vector.broadcast %36 : vector<1x8xf32> to vector<8x8xf32>
    %38 = arith.addf %35, %37 : vector<8x8xf32>
    %c0_29 = arith.constant 0 : index
    %c0_30 = arith.constant 0 : index
    %39 = vector.load %arg12[%c0_29, %c0_30] : memref<8x8xf32, #tpu.memory_space<vmem>>, vector<8x8xf32>
    tpu.vector_store %arg12[%c0_29, %c0_30], %38 {strides = array<i32>} : memref<8x8xf32, #tpu.memory_space<vmem>>, vector<8x8xf32>,
    return
  }
  func.func @transform_0(%arg0: i32) -> (i32, i32) {
    %c0_i32 = arith.constant 0 : i32
    %c0_i32_0 = arith.constant 0 : i32
    return %arg0, %c0_i32 : i32, i32
  }
  func.func @transform_1(%arg0: i32) -> (i32, i32) {
    %c0_i32 = arith.constant 0 : i32
    %c0_i32_0 = arith.constant 0 : i32
    %c0_i32_1 = arith.constant 0 : i32
    return %c0_i32, %c0_i32_0 : i32, i32
  }
  func.func @transform_2(%arg0: i32) -> (i32, i32) {
    %c0_i32 = arith.constant 0 : i32
    %c0_i32_0 = arith.constant 0 : i32
    %c0_i32_1 = arith.constant 0 : i32
    return %c0_i32, %c0_i32_0 : i32, i32
  }
  func.func @transform_3(%arg0: i32) -> (i32, i32) {
    %c0_i32 = arith.constant 0 : i32
    %c0_i32_0 = arith.constant 0 : i32
    %c0_i32_1 = arith.constant 0 : i32
    return %c0_i32, %c0_i32_0 : i32, i32
  }
  func.func @transform_4(%arg0: i32) -> (i32, i32) {
    %c0_i32 = arith.constant 0 : i32
    %c0_i32_0 = arith.constant 0 : i32
    %c0_i32_1 = arith.constant 0 : i32
    return %c0_i32, %c0_i32_0 : i32, i32
  }
  func.func @transform_5(%arg0: i32) -> (i32, i32) {
    %c0_i32 = arith.constant 0 : i32
    %c0_i32_0 = arith.constant 0 : i32
    %c0_i32_1 = arith.constant 0 : i32
    return %c0_i32, %c0_i32_0 : i32, i32
  }
  func.func @transform_6(%arg0: i32) -> (i32, i32) {
    %c0_i32 = arith.constant 0 : i32
    %c0_i32_0 = arith.constant 0 : i32
    %c0_i32_1 = arith.constant 0 : i32
    return %c0_i32, %c0_i32_0 : i32, i32
  }
  func.func @transform_7(%arg0: i32) -> (i32, i32) {
    %c0_i32 = arith.constant 0 : i32
    %c0_i32_0 = arith.constant 0 : i32
    %c0_i32_1 = arith.constant 0 : i32
    return %c0_i32, %c0_i32_0 : i32, i32
  }
  func.func @transform_8(%arg0: i32) -> (i32, i32) {
    %c0_i32 = arith.constant 0 : i32
    %c0_i32_0 = arith.constant 0 : i32
    %c0_i32_1 = arith.constant 0 : i32
    return %c0_i32, %c0_i32_0 : i32, i32
  }
  func.func @transform_9(%arg0: i32) -> (i32, i32) {
    %c0_i32 = arith.constant 0 : i32
    %c0_i32_0 = arith.constant 0 : i32
    %c0_i32_1 = arith.constant 0 : i32
    return %c0_i32, %c0_i32_0 : i32, i32
  }
  func.func @transform_10(%arg0: i32) -> (i32, i32) {
    %c0_i32 = arith.constant 0 : i32
    %c0_i32_0 = arith.constant 0 : i32
    %c0_i32_1 = arith.constant 0 : i32
    return %c0_i32, %c0_i32_0 : i32, i32
  }
  func.func @transform_11(%arg0: i32) -> (i32, i32) {
    %c0_i32 = arith.constant 0 : i32
    %c0_i32_0 = arith.constant 0 : i32
    return %arg0, %c0_i32 : i32, i32
  }
}

</mosaic_0001>

<bundles_post_ra>
// kernel: dqn_dnn_forward.1
= control target key start
LH: loop header
LB: loop body
LE: loop exit
PB: predicated region body
PF: predicated region fallthrough
CT: control target
= control target key end

     0   :  { %s6021_s0 = inlined_call_operand.vmem [shape: f32[16,64], index: 0, kind: input, shape index: {}]   ;;  %s6022_s1 = inlined_call_operand.hbm [shape: bf16[64,1024], index: 1, kind: input, shape index: {}]   ;;  %s6023_s2 = inlined_call_operand.vmem [shape: f32[1,1024], index: 2, kind: input, shape index: {}]   ;;  %s6024_s3 = inlined_call_operand.hbm [shape: bf16[1024,512], index: 3, kind: input, shape index: {}]   ;;  %s6025_s4 = inlined_call_operand.vmem [shape: f32[1,512], index: 4, kind: input, shape index: {}]   ;;  %s6026_s5 = inlined_call_operand.hbm [shape: bf16[512,256], index: 5, kind: input, shape index: {}]   ;;  %s6027_s6 = inlined_call_operand.vmem [shape: f32[1,256], index: 6, kind: input, shape index: {}]   ;;  %s6028_s7 = inlined_call_operand.hbm [shape: bf16[256,128], index: 7, kind: input, shape index: {}]   ;;  %s6029_s8 = inlined_call_operand.vmem [shape: f32[1,128], index: 8, kind: input, shape index: {}]   ;;  %s6030_s9 = inlined_call_operand.vmem [shape: bf16[128,8], index: 9, kind: input, shape index: {}]   ;;  %s6031_s10 = inlined_call_operand.vmem [shape: f32[1,8], index: 10, kind: input, shape index: {}]   ;;  %s6032_s11 = inlined_call_operand.vmem [shape: f32[16,8], index: 11, kind: output, shape index: {}]  }
   0x1   :  { %6033 = sst [smem:[#allocation12_spill]] %s6022_s1 }
   0x2   :  { %6034 = sst [smem:[#allocation13_spill]] %s6024_s3 }
   0x3   :  { %16 = vsyncpa [#allocation3], 0 }
   0x4   :  { %17 = vsyncpa [#allocation5], 0 }
   0x5   :  { %18 = vsyncpa [#allocation8], 0  ;;  %s5768_s17 = smov 0  }
   0x6 LB: > { %s6035_s3 = sld [smem:[#allocation13_spill]]  ;;  %s5777_s21 = sadd.s32 4294967295, %s5694_s17   ;;  %s5694_s17 = sphi %s5768_s17, %s24_s17  }
   0x7   : > { %p3593_p0 = scmp.ge.s32.totalorder %s5694_s17, 1  ;;  %p291_p1 = scmp.lt.s32.totalorder %s5694_s17, 3 }
   0x8   : > { %p5525_p2 = scmp.eq.s32.totalorder %s5777_s21, 0  ;;  %s5696_s23 = smov [#allocation4]  }
   0x9   : > { %p5782_p3 = pnand %p3593_p0, %p291_p1  ;;  %s321_s24 = sshll.u32 %s5696_s23, 4  ;;  %s322_s24 = int_to_ptr.vmem [resolvable:$true] %s321_s24 }
   0xa   : > { %s6037_s1 = sld [smem:[#allocation12_spill]]  ;;  %s5697_s29 = smov [#allocation2]  }
   0xb   : > { %p5512_p4 = pneg %p5782_p3  ;;  %s304_s30 = sshll.u32 %s5697_s29, 4  ;;  %s305_s30 = int_to_ptr.vmem [resolvable:$true] %s304_s30 }
   0xc   : > { %s319_s20 = sshll.u32 %s6035_s3, 4  ;;  %s5698_s12 = smov 256   ;;  %s320_s20 = int_to_ptr.hbm [resolvable:$true] %s319_s20 }
   0xd   : > { %p5793_p5 = pnand %p5525_p2, %p5512_p4  ;;  %s5699_s13 = smov 16  }
   0xe   : > { %s336_s16 = sshll.u32 %s6026_s5, 4  ;;  %s5700_s18 = smov 512   ;;  %s337_s16 = int_to_ptr.hbm [resolvable:$true] %s336_s16 }
   0xf   : > { %5518 = dma.hbm_to_vmem [thread:$0]  (!%p5793_p5), %s320_s20, 32768, %s322_s24, [#allocation5], %s5698_s12, %s5698_s12, %s5699_s13  }
  0x10   : > { %s302_s27 = sshll.u32 %s6037_s1, 4  ;;  %s5701_s19 = smov 32   ;;  %s303_s27 = int_to_ptr.hbm [resolvable:$true] %s302_s27 }
  0x11   : > { %5515 = dma.hbm_to_vmem [thread:$0]  (!%p5793_p5), %s303_s27, 4096, %s305_s30, [#allocation3], %s5700_s18, %s5700_s18, %s5701_s19  }
  0x12   : > { %s5702_s23 = smov [#allocation6]   ;;  %s5703_s26 = smov 128  }
  0x13   : > { %s338_s25 = sshll.u32 %s5702_s23, 4  ;;  %s5704_s29 = smov 8   ;;  %s339_s25 = int_to_ptr.vmem [resolvable:$true] %s338_s25 }
  0x14   : > { %5521 = dma.hbm_to_vmem [thread:$0]  (!%p5793_p5), %s337_s16, 8192, %s339_s25, [#allocation5], %s5703_s26, %s5703_s26, %s5704_s29  }
  0x15   : > { %s353_s20 = sshll.u32 %s6028_s7, 4  ;;  %s5705_s24 = smov [#allocation7]   ;;  %s354_s20 = int_to_ptr.hbm [resolvable:$true] %s353_s20 }
  0x16   : > { %s355_s12 = sshll.u32 %s5705_s24, 4  ;;  %s5706_s13 = smov 64   ;;  %s356_s12 = int_to_ptr.vmem [resolvable:$true] %s355_s12 }
  0x17   : > { %s5707_s14 = smov 4   ;;  %387 = sbr.rel (%p5782_p3) target bundleno = 963 (0x3c3), region = 64 }
  0x18   : > { %5524 = dma.hbm_to_vmem [thread:$0]  (!%p5793_p5), %s354_s20, 2048, %s356_s12, [#allocation8], %s5706_s13, %s5706_s13, %s5707_s14  }
  0x1c   : > { %5681 = dma.done.wait (%p5525_p2), [#allocation3], 4096  }
  0x1d   : > { %5683 = vsyncadd (%p5525_p2), [#allocation3], 4294963200 }
  0x1e   : > { %5685 = dma.done.wait (%p5525_p2), [#allocation5], 40960  }
  0x1f   : > { %5687 = vsyncadd (%p5525_p2), [#allocation5], 4294926336 }
  0x20   : > { %5689 = dma.done.wait (%p5525_p2), [#allocation8], 2048  }
  0x21   : > { %5691 = vsyncadd (%p5525_p2), [#allocation8], 4294965248  ;;  %p441_p6 = scmp.lt.s32.totalorder %s5777_s21, 1  ;;  %v3704_v0 = vld [vmem:[#allocation2 + $0xc0] sm:$0xf]  ;;  %vm662_vm0 = vcmask 523264  }
  0x22   : > { %v5148_v1 = vld [vmem:[#allocation2 + $0xdc] sm:$0xf0]  ;;  %v5144_v2 = vld [vmem:[#allocation2 + $0xc4] sm:$0xf]  ;;  %v3712_v5 = vld [vmem:[#allocation2 + $0xc8] sm:$0xf] }
  0x23   : > { %s6040_s21 = smov (!%p441_p6, %s5777_s21), 1  ;;  %v3705_v3 = vor.u32 %v5148_v1, %v3704_v0  ;;  %v3706_v4 = vld [vmem:[#allocation2 + $0xe0] sm:$0xf0]  ;;  %v5149_v6 = vld [vmem:[#allocation2 + $0xe4] sm:$0xf0]  ;;  %vm3495_vm1 = vcmask 64512  }
  0x24   : > { %s3604_s1 = sshll.u32 %s6040_s21, 3  ;;  %v3709_v7 = vor.u32 %v5144_v2, %v3706_v4  ;;  %v3713_v8 = vor.u32 %v5149_v6, %v3712_v5  ;;  %v3672_v9 = vld [vmem:[#allocation2 + $0x80] sm:$0xf]  ;;  %v5136_v11 = vld [vmem:[#allocation2 + $0x84] sm:$0xf] }
  0x25   : > { %v5140_v10 = vld [vmem:[#allocation2 + $0x9c] sm:$0xf0]  ;;  %670 = vmatpush.bf16.msra.mxu3 %v3705_v3  ;;  %v3674_v13 = vld [vmem:[#allocation2 + $0xa0] sm:$0xf0]  ;;  %v3680_v14 = vld [vmem:[#allocation2 + $0x88] sm:$0xf]  ;;  %s444_s27 = scalar_lea.vmem %s6021_s0, %s3604_s1  ;;  %s448_s12 = scalar_lea.vmem %s6032_s11, %s3604_s1 }
  0x26   : > { %v3673_v12 = vor.u32 %v5140_v10, %v3672_v9  ;;  %v5141_v15 = vld [vmem:[#allocation2 + $0xa4] sm:$0xf0]  ;;  %683 = vmatpush.bf16.msra.mxu1 %v3709_v7  ;;  %696 = vmatpush.bf16.msra.mxu2 %v3713_v8  ;;  %v3677_v16 = vor.u32 %v5136_v11, %v3674_v13  ;;  %v3640_v18 = vld [vmem:[#allocation2 + $0x40] sm:$0xf]  ;;  %v5128_v20 = vld [vmem:[#allocation2 + $0x44] sm:$0xf] }
  0x27   : > { %v3681_v17 = vor.u32 %v5141_v15, %v3680_v14  ;;  %v5132_v19 = vld [vmem:[#allocation2 + $0x5c] sm:$0xf0]  ;;  %v3642_v21 = vld [vmem:[#allocation2 + $0x60] sm:$0xf0]  ;;  %v3648_v22 = vld [vmem:[#allocation2 + $0x48] sm:$0xf] }
  0x28   : > { %v5133_v23 = vld [vmem:[#allocation2 + $0x64] sm:$0xf0]  ;;  %v3641_v24 = vor.u32 %v5132_v19, %v3640_v18  ;;  %v3608_v25 = vld [vmem:[#allocation2] sm:$0xf]  ;;  %v3645_v26 = vor.u32 %v5128_v20, %v3642_v21  ;;  %v5120_v29 = vld [vmem:[#allocation2 + $0x4] sm:$0xf] }
  0x29   : > { %671 = vmatpush.bf16.msra.mxu3 %v3673_v12  ;;  %v3649_v27 = vor.u32 %v5133_v23, %v3648_v22  ;;  %v5124_v28 = vld [vmem:[#allocation2 + $0x1c] sm:$0xf0]  ;;  %v3610_v30 = vld [vmem:[#allocation2 + $0x20] sm:$0xf0]  ;;  %v3616_v31 = vld [vmem:[#allocation2 + $0x8] sm:$0xf] }
  0x2a   : > { %684 = vmatpush.bf16.msra.mxu1 %v3677_v16  ;;  %697 = vmatpush.bf16.msra.mxu2 %v3681_v17  ;;  %v5125_v32 = vld [vmem:[#allocation2 + $0x24] sm:$0xf0]  ;;  %v5145_v33 = vld [vmem:[#allocation2 + $0xcc] sm:$0xf]  ;;  %v5146_v35 = vld [vmem:[#allocation2 + $0xd4] sm:$0xf]  ;;  %v3609_v37 = vor.u32 %v5124_v28, %v3608_v25  ;;  %v3613_v41 = vor.u32 %v5120_v29, %v3610_v30 }
  0x2b   : > { %v3714_v34 = vld [vmem:[#allocation2 + $0xe8] sm:$0xf0]  ;;  %v3722_v36 = vld [vmem:[#allocation2 + $0xf0] sm:$0xf0]  ;;  %v450_v38 = vld [vmem:[%s444_s27] sm:$0xff]  ;;  %v3617_v42 = vor.u32 %v5125_v32, %v3616_v31 }
  0x2c   : > { %v3728_v39 = vld [vmem:[#allocation2 + $0xd8] sm:$0xf]  ;;  %v3720_v43 = vld [vmem:[#allocation2 + $0xd0] sm:$0xf]  ;;  %v3717_v45 = vor.u32 %v5145_v33, %v3714_v34  ;;  %v3725_v46 = vor.u32 %v5146_v35, %v3722_v36  ;;  %v5137_v47 = vld [vmem:[#allocation2 + $0x8c] sm:$0xf]  ;;  %v5835_v50 = vpack.c.bf16 %v450_v38, %v450_v38 }
  0x2d   : > { %672 = vmatpush.bf16.msra.mxu3 %v3641_v24  ;;  %v5151_v40 = vld [vmem:[#allocation2 + $0xf4] sm:$0xf0]  ;;  %v5150_v44 = vld [vmem:[#allocation2 + $0xec] sm:$0xf0]  ;;  %v3682_v48 = vld [vmem:[#allocation2 + $0xa8] sm:$0xf0] }
  0x2e   : > { %685 = vmatpush.bf16.msra.mxu1 %v3645_v26  ;;  %698 = vmatpush.bf16.msra.mxu2 %v3649_v27  ;;  %v3721_v49 = vor.u32 %v5150_v44, %v3720_v43  ;;  %v3729_v51 = vor.u32 %v5151_v40, %v3728_v39  ;;  %v5138_v52 = vld [vmem:[#allocation2 + $0x94] sm:$0xf]  ;;  %v3696_v54 = vld [vmem:[#allocation2 + $0x98] sm:$0xf]  ;;  %v3688_v56 = vld [vmem:[#allocation2 + $0x90] sm:$0xf]  ;;  %v3685_v59 = vor.u32 %v5137_v47, %v3682_v48 }
  0x2f   : > { %v3690_v53 = vld [vmem:[#allocation2 + $0xb0] sm:$0xf0]  ;;  %v5143_v55 = vld [vmem:[#allocation2 + $0xb4] sm:$0xf0]  ;;  %v5142_v57 = vld [vmem:[#allocation2 + $0xac] sm:$0xf0] }
  0x30   : > { %722 = vmatpush.bf16.msra.mxu0 %v3721_v49  ;;  %v3689_v58 = vor.u32 %v5142_v57, %v3688_v56  ;;  %v3693_v60 = vor.u32 %v5138_v52, %v3690_v53  ;;  %v5129_v61 = vld [vmem:[#allocation2 + $0x4c] sm:$0xf]  ;;  %v3656_v63 = vld [vmem:[#allocation2 + $0x50] sm:$0xf]  ;;  %v3697_v0 = vor.u32 %v5143_v55, %v3696_v54  ;;  %v5130_v1 = vld [vmem:[#allocation2 + $0x54] sm:$0xf] }
  0x31   : > { %673 = vmatpush.bf16.msra.mxu3 %v3609_v37  ;;  %v3650_v62 = vld [vmem:[#allocation2 + $0x68] sm:$0xf0]  ;;  %v3658_v2 = vld [vmem:[#allocation2 + $0x70] sm:$0xf0]  ;;  %v5134_v3 = vld [vmem:[#allocation2 + $0x6c] sm:$0xf0] }
  0x32   : > { %686 = vmatpush.bf16.msra.mxu1 %v3613_v41  ;;  %699 = vmatpush.bf16.msra.mxu2 %v3617_v42  ;;  %v3664_v4 = vld [vmem:[#allocation2 + $0x58] sm:$0xf]  ;;  %v5121_v6 = vld [vmem:[#allocation2 + $0xc] sm:$0xf]  ;;  %v3657_v7 = vor.u32 %v5134_v3, %v3656_v63  ;;  %v3653_v8 = vor.u32 %v5129_v61, %v3650_v62  ;;  %v3661_v9 = vor.u32 %v5130_v1, %v3658_v2  ;;  %v3624_v11 = vld [vmem:[#allocation2 + $0x10] sm:$0xf] }
  0x33   : > { %v5135_v5 = vld [vmem:[#allocation2 + $0x74] sm:$0xf0]  ;;  %v3618_v10 = vld [vmem:[#allocation2 + $0x28] sm:$0xf0]  ;;  %v5126_v12 = vld [vmem:[#allocation2 + $0x2c] sm:$0xf0] }
  0x34   : > { %3734 = vmatmul.msk.bf16.vlgmr.msra.gmra.mxu3 %vm662_vm0, %v5835_v50  ;;  %723 = vmatpush.bf16.msra.mxu0 %v3689_v58  ;;  %v3665_v13 = vor.u32 %v5135_v5, %v3664_v4  ;;  %v5122_v14 = vld [vmem:[#allocation2 + $0x14] sm:$0xf]  ;;  %v3632_v16 = vld [vmem:[#allocation2 + $0x18] sm:$0xf]  ;;  %v5147_v18 = vld [vmem:[#allocation2 + $0xdc] sm:$0xf]  ;;  %v3625_v20 = vor.u32 %v5126_v12, %v3624_v11  ;;  %v3621_v24 = vor.u32 %v5121_v6, %v3618_v10 }
  0x35   : > { %709 = vmatpush.bf16.msrb.mxu3 %v3717_v45  ;;  %3735 = vmatmul.msk.bf16.vlgmr.msra.gmra.mxu1 %vm662_vm0, %v5835_v50  ;;  %v3626_v15 = vld [vmem:[#allocation2 + $0x30] sm:$0xf0]  ;;  %v5127_v17 = vld [vmem:[#allocation2 + $0x34] sm:$0xf0]  ;;  %v3730_v19 = vld [vmem:[#allocation2 + $0xf8] sm:$0xf0] }
  0x36   : > { %735 = vmatpush.bf16.msrb.mxu1 %v3725_v46  ;;  %748 = vmatpush.bf16.msrb.mxu2 %v3729_v51  ;;  %v3984_v21 = vld [vmem:[#allocation4 + $0x1e0] sm:$0xf]  ;;  %v5214_v22 = vld [vmem:[#allocation4 + $0x1ec] sm:$0xf0]  ;;  %v3629_v25 = vor.u32 %v5122_v14, %v3626_v15  ;;  %v3633_v29 = vor.u32 %v5127_v17, %v3632_v16  ;;  %v3733_v30 = vor.u32 %v5147_v18, %v3730_v19  ;;  %v5139_v32 = vld [vmem:[#allocation2 + $0x9c] sm:$0xf] }
  0x37   : > { %3736 = vmatmul.msk.bf16.vlgmr.msra.gmra.mxu2 %vm662_vm0, %v5835_v50  ;;  %v3856_v23 = vld [vmem:[#allocation4 + $0xe0] sm:$0xf]  ;;  %v5182_v26 = vld [vmem:[#allocation4 + $0xec] sm:$0xf0]  ;;  %v3985_v31 = vor.u32 %v5214_v22, %v3984_v21  ;;  %v3698_v33 = vld [vmem:[#allocation2 + $0xb8] sm:$0xf0] }
  0x38   : > { %724 = vmatpush.bf16.msra.mxu0 %v3657_v7  ;;  %v4112_v27 = vld [vmem:[#allocation4 + $0x2e0] sm:$0xf]  ;;  %v5246_v28 = vld [vmem:[#allocation4 + $0x2ec] sm:$0xf0]  ;;  %v3857_v34 = vor.u32 %v5182_v26, %v3856_v23  ;;  %v3701_v42 = vor.u32 %v5139_v32, %v3698_v33  ;;  %v5131_v43 = vld [vmem:[#allocation2 + $0x5c] sm:$0xf] }
  0x39   : > { %710 = vmatpush.bf16.msrb.mxu3 %v3685_v59  ;;  %v4113_v35 = vor.u32 %v5246_v28, %v4112_v27  ;;  %v3968_v36 = vld [vmem:[#allocation4 + $0x1c0] sm:$0xf]  ;;  %v5210_v37 = vld [vmem:[#allocation4 + $0x1cc] sm:$0xf0]  ;;  %v3666_v44 = vld [vmem:[#allocation2 + $0x78] sm:$0xf0] }
  0x3a   : > { %736 = vmatpush.bf16.msrb.mxu1 %v3693_v60  ;;  %749 = vmatpush.bf16.msrb.mxu2 %v3697_v0  ;;  %v3840_v38 = vld [vmem:[#allocation4 + $0xc0] sm:$0xf]  ;;  %v5178_v39 = vld [vmem:[#allocation4 + $0xcc] sm:$0xf0]  ;;  %v3969_v45 = vor.u32 %v5210_v37, %v3968_v36  ;;  %v3669_v55 = vor.u32 %v5131_v43, %v3666_v44  ;;  %v5123_v56 = vld [vmem:[#allocation2 + $0x1c] sm:$0xf] }
  0x3b   : > { %v4096_v40 = vld [vmem:[#allocation4 + $0x2c0] sm:$0xf]  ;;  %v5242_v41 = vld [vmem:[#allocation4 + $0x2cc] sm:$0xf0]  ;;  %v3841_v48 = vor.u32 %v5178_v39, %v3840_v38  ;;  %v3634_v57 = vld [vmem:[#allocation2 + $0x38] sm:$0xf0] }
  0x3c   : > { %725 = vmatpush.bf16.msra.mxu0 %v3625_v20  ;;  %v3952_v46 = vld [vmem:[#allocation4 + $0x1a0] sm:$0xf]  ;;  %v5206_v47 = vld [vmem:[#allocation4 + $0x1ac] sm:$0xf0]  ;;  %v4097_v49 = vor.u32 %v5242_v41, %v4096_v40  ;;  %v3637_v5 = vor.u32 %v5123_v56, %v3634_v57 }
  0x3d   : > { %711 = vmatpush.bf16.msrb.mxu3 %v3653_v8  ;;  %v3824_v51 = vld [vmem:[#allocation4 + $0xa0] sm:$0xf]  ;;  %v5174_v52 = vld [vmem:[#allocation4 + $0xac] sm:$0xf0]  ;;  %v3953_v58 = vor.u32 %v5206_v47, %v3952_v46 }
  0x3e   : > { %737 = vmatpush.bf16.msrb.mxu1 %v3661_v9  ;;  %750 = vmatpush.bf16.msrb.mxu2 %v3665_v13  ;;  %v4080_v53 = vld [vmem:[#allocation4 + $0x2a0] sm:$0xf]  ;;  %v5238_v54 = vld [vmem:[#allocation4 + $0x2ac] sm:$0xf0]  ;;  %v3825_v61 = vor.u32 %v5174_v52, %v3824_v51 }
  0x3f   : > { %3738 = vmatmul.msk.bf16.vlgmr.msra.gmra.mxu0 %vm662_vm0, %v5835_v50  ;;  %v3936_v59 = vld [vmem:[#allocation4 + $0x180] sm:$0xf]  ;;  %v5202_v60 = vld [vmem:[#allocation4 + $0x18c] sm:$0xf0]  ;;  %v4081_v62 = vor.u32 %v5238_v54, %v4080_v53 }
  0x40   : > { %2332 = vmatpush.bf16.msrb.mxu0 %v3857_v34  ;;  %v3808_v63 = vld [vmem:[#allocation4 + $0x80] sm:$0xf]  ;;  %v5170_v0 = vld [vmem:[#allocation4 + $0x8c] sm:$0xf0]  ;;  %v3937_v6 = vor.u32 %v5202_v60, %v3936_v59 }
  0x41   : > { %712 = vmatpush.bf16.msrb.mxu3 %v3621_v24  ;;  %v4064_v1 = vld [vmem:[#allocation4 + $0x280] sm:$0xf]  ;;  %v5234_v2 = vld [vmem:[#allocation4 + $0x28c] sm:$0xf0]  ;;  %v3809_v9 = vor.u32 %v5170_v0, %v3808_v63 }
  0x42   : > { %738 = vmatpush.bf16.msrb.mxu1 %v3629_v25  ;;  %751 = vmatpush.bf16.msrb.mxu2 %v3633_v29  ;;  %v4240_v3 = vld [vmem:[#allocation4 + $0x3e0] sm:$0xf]  ;;  %v5278_v4 = vld [vmem:[#allocation4 + $0x3ec] sm:$0xf0]  ;;  %v4065_v10 = vor.u32 %v5234_v2, %v4064_v1 }
  0x43   : > { %v3920_v7 = vld [vmem:[#allocation4 + $0x160] sm:$0xf]  ;;  %v5198_v8 = vld [vmem:[#allocation4 + $0x16c] sm:$0xf0]  ;;  %v4241_v15 = vor.u32 %v5278_v4, %v4240_v3 }
  0x44   : > { %3737 = vmatmul.msk.bf16.vlgmr.msrb.gmra.mxu3 %vm662_vm0, %v5835_v50  ;;  %2333 = vmatpush.bf16.msrb.mxu0 %v3841_v48  ;;  %v3792_v11 = vld [vmem:[#allocation4 + $0x60] sm:$0xf]  ;;  %v5166_v12 = vld [vmem:[#allocation4 + $0x6c] sm:$0xf0]  ;;  %v3921_v16 = vor.u32 %v5198_v8, %v3920_v7 }
  0x45   : > { %761 = vmatpush.bf16.msra.mxu3 %v3733_v30  ;;  %3739 = vmatmul.msk.bf16.vlgmr.msrb.gmra.mxu1 %vm662_vm0, %v5835_v50  ;;  %v4048_v13 = vld [vmem:[#allocation4 + $0x260] sm:$0xf]  ;;  %v5230_v14 = vld [vmem:[#allocation4 + $0x26c] sm:$0xf0]  ;;  %v3793_v21 = vor.u32 %v5166_v12, %v3792_v11 }
  0x46   : > { %2345 = vmatpush.bf16.msra.mxu1 %v3985_v31  ;;  %2358 = vmatpush.bf16.msra.mxu2 %v4113_v35  ;;  %v4224_v17 = vld [vmem:[#allocation4 + $0x3c0] sm:$0xf]  ;;  %v5274_v18 = vld [vmem:[#allocation4 + $0x3cc] sm:$0xf0]  ;;  %v4049_v22 = vor.u32 %v5230_v14, %v4048_v13 }
  0x47   : > { %3740 = vmatmul.msk.bf16.vlgmr.msrb.gmra.mxu2 %vm662_vm0, %v5835_v50  ;;  %v3904_v19 = vld [vmem:[#allocation4 + $0x140] sm:$0xf]  ;;  %v5194_v20 = vld [vmem:[#allocation4 + $0x14c] sm:$0xf0]  ;;  %v4225_v27 = vor.u32 %v5274_v18, %v4224_v17 }
  0x48   : > { %2334 = vmatpush.bf16.msrb.mxu0 %v3825_v61  ;;  %v3776_v23 = vld [vmem:[#allocation4 + $0x40] sm:$0xf]  ;;  %v5162_v24 = vld [vmem:[#allocation4 + $0x4c] sm:$0xf0]  ;;  %v3905_v28 = vor.u32 %v5194_v20, %v3904_v19 }
  0x49   : > { %762 = vmatpush.bf16.msra.mxu3 %v3701_v42  ;;  %v4032_v25 = vld [vmem:[#allocation4 + $0x240] sm:$0xf]  ;;  %v5226_v26 = vld [vmem:[#allocation4 + $0x24c] sm:$0xf0]  ;;  %v3777_v33 = vor.u32 %v5162_v24, %v3776_v23 }
  0x4a   : > { %2346 = vmatpush.bf16.msra.mxu1 %v3969_v45  ;;  %2359 = vmatpush.bf16.msra.mxu2 %v4097_v49  ;;  %v4208_v29 = vld [vmem:[#allocation4 + $0x3a0] sm:$0xf]  ;;  %v5270_v30 = vld [vmem:[#allocation4 + $0x3ac] sm:$0xf0]  ;;  %v4033_v34 = vor.u32 %v5226_v26, %v4032_v25 }
  0x4b   : > { %v3888_v31 = vld [vmem:[#allocation4 + $0x120] sm:$0xf]  ;;  %v5190_v32 = vld [vmem:[#allocation4 + $0x12c] sm:$0xf0]  ;;  %v4209_v41 = vor.u32 %v5270_v30, %v4208_v29 }
  0x4c   : > { %2335 = vmatpush.bf16.msrb.mxu0 %v3809_v9  ;;  %v3760_v35 = vld [vmem:[#allocation4 + $0x20] sm:$0xf]  ;;  %v5158_v36 = vld [vmem:[#allocation4 + $0x2c] sm:$0xf0]  ;;  %v3889_v42 = vor.u32 %v5190_v32, %v3888_v31 }
  0x4d   : > { %763 = vmatpush.bf16.msra.mxu3 %v3669_v55  ;;  %v4016_v37 = vld [vmem:[#allocation4 + $0x220] sm:$0xf]  ;;  %v5222_v38 = vld [vmem:[#allocation4 + $0x22c] sm:$0xf0]  ;;  %v3761_v47 = vor.u32 %v5158_v36, %v3760_v35 }
  0x4e   : > { %2347 = vmatpush.bf16.msra.mxu1 %v3953_v58  ;;  %2360 = vmatpush.bf16.msra.mxu2 %v4081_v62  ;;  %v3872_v39 = vld [vmem:[#allocation4 + $0x100] sm:$0xf]  ;;  %v5186_v40 = vld [vmem:[#allocation4 + $0x10c] sm:$0xf0]  ;;  %v4017_v48 = vor.u32 %v5222_v38, %v4016_v37 }
  0x4f   : > { %v4496_v43 = vld [vmem:[#allocation4 + $0x5e0] sm:$0xf]  ;;  %v5266_v45 = vld [vmem:[#allocation4 + $0x38c] sm:$0xf0]  ;;  %v3873_v57 = vor.u32 %v5186_v40, %v3872_v39 }
  0x50   : > { %2336 = vmatpush.bf16.msrb.mxu0 %v3793_v21  ;;  %v4192_v44 = vld [vmem:[#allocation4 + $0x380] sm:$0xf]  ;;  %v5342_v46 = vld [vmem:[#allocation4 + $0x5ec] sm:$0xf0] }
  0x51   : > { %764 = vmatpush.bf16.msra.mxu3 %v3637_v5  ;;  %v3744_v49 = vld [vmem:[#allocation4] sm:$0xf]  ;;  %v5154_v51 = vld [vmem:[#allocation4 + $0xc] sm:$0xf0]  ;;  %v4193_v53 = vor.u32 %v5266_v45, %v4192_v44  ;;  %v4497_v61 = vor.u32 %v5342_v46, %v4496_v43 }
  0x52   : > { %2348 = vmatpush.bf16.msra.mxu1 %v3937_v6  ;;  %2361 = vmatpush.bf16.msra.mxu2 %v4065_v10  ;;  %v5218_v52 = vld [vmem:[#allocation4 + $0x20c] sm:$0xf0]  ;;  %v4368_v54 = vld [vmem:[#allocation4 + $0x4e0] sm:$0xf]  ;;  %v3745_v62 = vor.u32 %v5154_v51, %v3744_v49 }
  0x53   : > { %v5310_v55 = vld [vmem:[#allocation4 + $0x4ec] sm:$0xf0]  ;;  %v4624_v56 = vld [vmem:[#allocation4 + $0x6e0] sm:$0xf] }
  0x54   : > { %3741 = vmatmul.msk.bf16.vlgmr.msra.gmra.mxu3 %vm662_vm0, %v5835_v50  ;;  %2337 = vmatpush.bf16.msrb.mxu0 %v3777_v33  ;;  %v4000_v50 = vld [vmem:[#allocation4 + $0x200] sm:$0xf]  ;;  %v5374_v58 = vld [vmem:[#allocation4 + $0x6ec] sm:$0xf0]  ;;  %v4369_v2 = vor.u32 %v5310_v55, %v4368_v54 }
  0x55   : > { %2371 = vmatpush.bf16.msrb.mxu3 %v4241_v15  ;;  %v4176_v59 = vld [vmem:[#allocation4 + $0x360] sm:$0xf]  ;;  %v5262_v60 = vld [vmem:[#allocation4 + $0x36c] sm:$0xf0]  ;;  %v4001_v1 = vor.u32 %v5218_v52, %v4000_v50  ;;  %v4625_v3 = vor.u32 %v5374_v58, %v4624_v56 }
  0x56   : > { %2349 = vmatpush.bf16.msra.mxu1 %v3921_v16  ;;  %2362 = vmatpush.bf16.msra.mxu2 %v4049_v22  ;;  %v4480_v63 = vld [vmem:[#allocation4 + $0x5c0] sm:$0xf]  ;;  %v5338_v0 = vld [vmem:[#allocation4 + $0x5cc] sm:$0xf0]  ;;  %v4177_v4 = vor.u32 %v5262_v60, %v4176_v59 }
  0x57   : > { %v4352_v5 = vld [vmem:[#allocation4 + $0x4c0] sm:$0xf]  ;;  %v5306_v6 = vld [vmem:[#allocation4 + $0x4cc] sm:$0xf0]  ;;  %v4481_v11 = vor.u32 %v5338_v0, %v4480_v63 }
  0x58   : > { %2338 = vmatpush.bf16.msrb.mxu0 %v3761_v47  ;;  %v4608_v7 = vld [vmem:[#allocation4 + $0x6c0] sm:$0xf]  ;;  %v5370_v8 = vld [vmem:[#allocation4 + $0x6cc] sm:$0xf0]  ;;  %v4353_v14 = vor.u32 %v5306_v6, %v4352_v5 }
  0x59   : > { %2372 = vmatpush.bf16.msrb.mxu3 %v4225_v27  ;;  %v4160_v9 = vld [vmem:[#allocation4 + $0x340] sm:$0xf]  ;;  %v5258_v10 = vld [vmem:[#allocation4 + $0x34c] sm:$0xf0]  ;;  %v4609_v15 = vor.u32 %v5370_v8, %v4608_v7 }
  0x5a   : > { %2350 = vmatpush.bf16.msra.mxu1 %v3905_v28  ;;  %2363 = vmatpush.bf16.msra.mxu2 %v4033_v34  ;;  %v4464_v12 = vld [vmem:[#allocation4 + $0x5a0] sm:$0xf]  ;;  %v5334_v13 = vld [vmem:[#allocation4 + $0x5ac] sm:$0xf0]  ;;  %v4161_v16 = vor.u32 %v5258_v10, %v4160_v9 }
  0x5b   : > { %v4336_v17 = vld [vmem:[#allocation4 + $0x4a0] sm:$0xf]  ;;  %v5302_v18 = vld [vmem:[#allocation4 + $0x4ac] sm:$0xf0]  ;;  %v4465_v23 = vor.u32 %v5334_v13, %v4464_v12 }
  0x5c   : > { %2339 = vmatpush.bf16.msrb.mxu0 %v3745_v62  ;;  %v4592_v19 = vld [vmem:[#allocation4 + $0x6a0] sm:$0xf]  ;;  %v5366_v20 = vld [vmem:[#allocation4 + $0x6ac] sm:$0xf0]  ;;  %v4337_v26 = vor.u32 %v5302_v18, %v4336_v17 }
  0x5d   : > { %2373 = vmatpush.bf16.msrb.mxu3 %v4209_v41  ;;  %v4144_v21 = vld [vmem:[#allocation4 + $0x320] sm:$0xf]  ;;  %v5254_v22 = vld [vmem:[#allocation4 + $0x32c] sm:$0xf0]  ;;  %v4593_v27 = vor.u32 %v5366_v20, %v4592_v19 }
  0x5e   : > { %2351 = vmatpush.bf16.msra.mxu1 %v3889_v42  ;;  %2364 = vmatpush.bf16.msra.mxu2 %v4017_v48  ;;  %v4448_v24 = vld [vmem:[#allocation4 + $0x580] sm:$0xf]  ;;  %v5330_v25 = vld [vmem:[#allocation4 + $0x58c] sm:$0xf0]  ;;  %v4145_v28 = vor.u32 %v5254_v22, %v4144_v21 }
  0x5f   : > { %v4320_v29 = vld [vmem:[#allocation4 + $0x480] sm:$0xf]  ;;  %v5298_v30 = vld [vmem:[#allocation4 + $0x48c] sm:$0xf0]  ;;  %v4449_v35 = vor.u32 %v5330_v25, %v4448_v24 }
  0x60   : > { %2384 = vmatpush.bf16.msra.mxu0 %v4369_v2  ;;  %v4576_v31 = vld [vmem:[#allocation4 + $0x680] sm:$0xf]  ;;  %v5362_v32 = vld [vmem:[#allocation4 + $0x68c] sm:$0xf0]  ;;  %v4321_v38 = vor.u32 %v5298_v30, %v4320_v29 }
  0x61   : > { %2374 = vmatpush.bf16.msrb.mxu3 %v4193_v53  ;;  %v4128_v33 = vld [vmem:[#allocation4 + $0x300] sm:$0xf]  ;;  %v5250_v34 = vld [vmem:[#allocation4 + $0x30c] sm:$0xf0]  ;;  %v4577_v39 = vor.u32 %v5362_v32, %v4576_v31 }
  0x62   : > { %2352 = vmatpush.bf16.msra.mxu1 %v3873_v57  ;;  %2365 = vmatpush.bf16.msra.mxu2 %v4001_v1  ;;  %v4432_v36 = vld [vmem:[#allocation4 + $0x560] sm:$0xf]  ;;  %v5326_v37 = vld [vmem:[#allocation4 + $0x56c] sm:$0xf0]  ;;  %v4129_v40 = vor.u32 %v5250_v34, %v4128_v33 }
  0x63   : > { %v4433_v41 = vor.u32 %v5326_v37, %v4432_v36  ;;  %v4416_v42 = vld [vmem:[#allocation4 + $0x540] sm:$0xf]  ;;  %v5322_v43 = vld [vmem:[#allocation4 + $0x54c] sm:$0xf0] }
  0x64   : > { %2385 = vmatpush.bf16.msra.mxu0 %v4353_v14  ;;  %v4417_v44 = vor.u32 %v5322_v43, %v4416_v42  ;;  %v4304_v45 = vld [vmem:[#allocation4 + $0x460] sm:$0xf]  ;;  %v5294_v46 = vld [vmem:[#allocation4 + $0x46c] sm:$0xf0] }
  0x65   : > { %2375 = vmatpush.bf16.msrb.mxu3 %v4177_v4  ;;  %v4560_v47 = vld [vmem:[#allocation4 + $0x660] sm:$0xf]  ;;  %v4305_v48 = vor.u32 %v5294_v46, %v4304_v45  ;;  %v5358_v49 = vld [vmem:[#allocation4 + $0x66c] sm:$0xf0] }
  0x66   : > { %2397 = vmatpush.bf16.msrb.mxu1 %v4497_v61  ;;  %2410 = vmatpush.bf16.msrb.mxu2 %v4625_v3  ;;  %v4752_v51 = vld [vmem:[#allocation4 + $0x7e0] sm:$0xf]  ;;  %v5406_v50 = vld [vmem:[#allocation4 + $0x7ec] sm:$0xf0]  ;;  %v4561_v52 = vor.u32 %v5358_v49, %v4560_v47  ;;  %v5208_v47 = vld [vmem:[#allocation4 + $0x1c4] sm:$0xf] }
  0x67   : > { %v4753_v53 = vor.u32 %v5406_v50, %v4752_v51  ;;  %v4400_v54 = vld [vmem:[#allocation4 + $0x520] sm:$0xf]  ;;  %v5318_v55 = vld [vmem:[#allocation4 + $0x52c] sm:$0xf0]  ;;  %v5180_v50 = vld [vmem:[#allocation4 + $0xe4] sm:$0xf] }
  0x68   : > { %2386 = vmatpush.bf16.msra.mxu0 %v4337_v26  ;;  %v4401_v56 = vor.u32 %v5318_v55, %v4400_v54  ;;  %v4288_v57 = vld [vmem:[#allocation4 + $0x440] sm:$0xf]  ;;  %v5290_v58 = vld [vmem:[#allocation4 + $0x44c] sm:$0xf0]  ;;  %v5244_v54 = vld [vmem:[#allocation4 + $0x2e4] sm:$0xf] }
  0x69   : > { %2376 = vmatpush.bf16.msrb.mxu3 %v4161_v16  ;;  %v4544_v59 = vld [vmem:[#allocation4 + $0x640] sm:$0xf]  ;;  %v4289_v60 = vor.u32 %v5290_v58, %v4288_v57  ;;  %v5354_v61 = vld [vmem:[#allocation4 + $0x64c] sm:$0xf0]  ;;  %v4114_v55 = vld [vmem:[#allocation4 + $0x2f0] sm:$0xf0] }
  0x6a   : > { %2398 = vmatpush.bf16.msrb.mxu1 %v4481_v11  ;;  %2411 = vmatpush.bf16.msrb.mxu2 %v4609_v15  ;;  %v4736_v62 = vld [vmem:[#allocation4 + $0x7c0] sm:$0xf]  ;;  %v5402_v63 = vld [vmem:[#allocation4 + $0x7cc] sm:$0xf0]  ;;  %v4545_v0 = vor.u32 %v5354_v61, %v4544_v59  ;;  %v5204_v61 = vld [vmem:[#allocation4 + $0x1a4] sm:$0xf] }
  0x6b   : > { %v4737_v1 = vor.u32 %v5402_v63, %v4736_v62  ;;  %v4384_v2 = vld [vmem:[#allocation4 + $0x500] sm:$0xf]  ;;  %v5314_v3 = vld [vmem:[#allocation4 + $0x50c] sm:$0xf0]  ;;  %v3954_v62 = vld [vmem:[#allocation4 + $0x1b0] sm:$0xf0] }
  0x6c   : > { %2387 = vmatpush.bf16.msra.mxu0 %v4321_v38  ;;  %v4385_v4 = vor.u32 %v5314_v3, %v4384_v2  ;;  %v4272_v5 = vld [vmem:[#allocation4 + $0x420] sm:$0xf]  ;;  %v5286_v6 = vld [vmem:[#allocation4 + $0x42c] sm:$0xf0]  ;;  %v3842_v2 = vld [vmem:[#allocation4 + $0xd0] sm:$0xf0] }
  0x6d   : > { %2377 = vmatpush.bf16.msrb.mxu3 %v4145_v28  ;;  %v4528_v7 = vld [vmem:[#allocation4 + $0x620] sm:$0xf]  ;;  %v4273_v8 = vor.u32 %v5286_v6, %v4272_v5  ;;  %v5350_v9 = vld [vmem:[#allocation4 + $0x62c] sm:$0xf0]  ;;  %v4098_v5 = vld [vmem:[#allocation4 + $0x2d0] sm:$0xf0]  ;;  %v3957_v6 = vor.u32 %v5204_v61, %v3954_v62 }
  0x6e   : > { %2399 = vmatpush.bf16.msrb.mxu1 %v4465_v23  ;;  %2412 = vmatpush.bf16.msrb.mxu2 %v4593_v27  ;;  %v4720_v10 = vld [vmem:[#allocation4 + $0x7a0] sm:$0xf]  ;;  %v5398_v11 = vld [vmem:[#allocation4 + $0x7ac] sm:$0xf0]  ;;  %v4529_v12 = vor.u32 %v5350_v9, %v4528_v7  ;;  %v3890_v61 = vld [vmem:[#allocation4 + $0x130] sm:$0xf0] }
  0x6f   : > { %v4721_v13 = vor.u32 %v5398_v11, %v4720_v10  ;;  %v4256_v14 = vld [vmem:[#allocation4 + $0x400] sm:$0xf]  ;;  %v5282_v15 = vld [vmem:[#allocation4 + $0x40c] sm:$0xf0]  ;;  %v5200_v11 = vld [vmem:[#allocation4 + $0x184] sm:$0xf] }
  0x70   : > { %2388 = vmatpush.bf16.msra.mxu0 %v4305_v48  ;;  %v4512_v16 = vld [vmem:[#allocation4 + $0x600] sm:$0xf]  ;;  %v4257_v17 = vor.u32 %v5282_v15, %v4256_v14  ;;  %v5346_v18 = vld [vmem:[#allocation4 + $0x60c] sm:$0xf0]  ;;  %v3970_v48 = vld [vmem:[#allocation4 + $0x1d0] sm:$0xf0] }
  0x71   : > { %2378 = vmatpush.bf16.msrb.mxu3 %v4129_v40  ;;  %v4704_v19 = vld [vmem:[#allocation4 + $0x780] sm:$0xf]  ;;  %v5394_v20 = vld [vmem:[#allocation4 + $0x78c] sm:$0xf0]  ;;  %v4513_v21 = vor.u32 %v5346_v18, %v4512_v16  ;;  %v3986_v40 = vld [vmem:[#allocation4 + $0x1f0] sm:$0xf0]  ;;  %v3973_v58 = vor.u32 %v5208_v47, %v3970_v48 }
  0x72   : > { %2400 = vmatpush.bf16.msrb.mxu1 %v4449_v35  ;;  %2413 = vmatpush.bf16.msrb.mxu2 %v4577_v39  ;;  %v4705_v22 = vor.u32 %v5394_v20, %v4704_v19  ;;  %v4688_v23 = vld [vmem:[#allocation4 + $0x760] sm:$0xf]  ;;  %v5390_v24 = vld [vmem:[#allocation4 + $0x76c] sm:$0xf0]  ;;  %v5212_v39 = vld [vmem:[#allocation4 + $0x1e4] sm:$0xf] }
  0x73   : > { %v4689_v25 = vor.u32 %v5390_v24, %v4688_v23  ;;  %v4672_v26 = vld [vmem:[#allocation4 + $0x740] sm:$0xf]  ;;  %v5386_v27 = vld [vmem:[#allocation4 + $0x74c] sm:$0xf0]  ;;  %v5172_v16 = vld [vmem:[#allocation4 + $0xa4] sm:$0xf] }
  0x74   : > { %2389 = vmatpush.bf16.msra.mxu0 %v4289_v60  ;;  %v4673_v28 = vor.u32 %v5386_v27, %v4672_v26  ;;  %v4656_v29 = vld [vmem:[#allocation4 + $0x720] sm:$0xf]  ;;  %v5382_v30 = vld [vmem:[#allocation4 + $0x72c] sm:$0xf0]  ;;  %v5236_v18 = vld [vmem:[#allocation4 + $0x2a4] sm:$0xf] }
  0x75   : > { %2423 = vmatpush.bf16.msra.mxu3 %v4753_v53  ;;  %v4657_v31 = vor.u32 %v5382_v30, %v4656_v29  ;;  %v5856_v32 = vld [vmem:[%s6023_s2] sm:$0xff]  ;;  %v5378_v34 = vld [vmem:[#allocation4 + $0x70c] sm:$0xf0]  ;;  %v4082_v19 = vld [vmem:[#allocation4 + $0x2b0] sm:$0xf0] }
  0x76   : > { %2401 = vmatpush.bf16.msrb.mxu1 %v4433_v41  ;;  %2414 = vmatpush.bf16.msrb.mxu2 %v4561_v52  ;;  %v4640_v33 = vld [vmem:[#allocation4 + $0x700] sm:$0xf]  ;;  %v487_v36 = vperm.slane %v5856_v32, 1  ;;  %v486_v41 = vperm.slane %v5856_v32, 0  ;;  %v488_v43 = vperm.slane %v5856_v32, 2  ;;  %v491_v9 = vperm.slane %v5856_v32, 5 }
  0x77   : > { %v4641_v35 = vor.u32 %v5378_v34, %v4640_v33  ;;  %v3858_v52 = vld [vmem:[#allocation4 + $0xf0] sm:$0xf0]  ;;  %v4085_v27 = vor.u32 %v5236_v18, %v4082_v19  ;;  %v5168_v29 = vld [vmem:[#allocation4 + $0x84] sm:$0xf]  ;;  %v492_v33 = vperm.slane %v5856_v32, 6 }
  0x78   : > { %2390 = vmatpush.bf16.msra.mxu0 %v4273_v8  ;;  %v3861_v60 = vor.u32 %v5180_v50, %v3858_v52  ;;  %v3922_v26 = vld [vmem:[#allocation4 + $0x170] sm:$0xf0]  ;;  %v5232_v34 = vld [vmem:[#allocation4 + $0x284] sm:$0xf] }
  0x79   : > { %2424 = vmatpush.bf16.msra.mxu3 %v4737_v1  ;;  %v5176_v1 = vld [vmem:[#allocation4 + $0xc4] sm:$0xf]  ;;  %v3810_v30 = vld [vmem:[#allocation4 + $0x90] sm:$0xf0] }
  0x7a   : > { %2402 = vmatpush.bf16.msrb.mxu1 %v4417_v44  ;;  %2415 = vmatpush.bf16.msrb.mxu2 %v4545_v0  ;;  %v3989_v44 = vor.u32 %v5212_v39, %v3986_v40  ;;  %v4117_v0 = vor.u32 %v5244_v54, %v4114_v55  ;;  %v3845_v10 = vor.u32 %v5176_v1, %v3842_v2  ;;  %v5164_v48 = vld [vmem:[#allocation4 + $0x64] sm:$0xf]  ;;  %v4050_v52 = vld [vmem:[#allocation4 + $0x270] sm:$0xf0] }
  0x7b   : > { %v5228_v50 = vld [vmem:[#allocation4 + $0x264] sm:$0xf]  ;;  %v4498_v18 = vld [vmem:[#allocation4 + $0x5f0] sm:$0xf0] }
  0x7c   : > { %2391 = vmatpush.bf16.msra.mxu0 %v4257_v17  ;;  %v3826_v17 = vld [vmem:[#allocation4 + $0xb0] sm:$0xf0]  ;;  %v5276_v55 = vld [vmem:[#allocation4 + $0x3e4] sm:$0xf]  ;;  %v4053_v1 = vor.u32 %v5228_v50, %v4050_v52 }
  0x7d   : > { %2425 = vmatpush.bf16.msra.mxu3 %v4721_v13  ;;  %v490_v13 = vperm.slane %v5856_v32, 4  ;;  %v3829_v23 = vor.u32 %v5172_v16, %v3826_v17  ;;  %v5160_v2 = vld [vmem:[#allocation4 + $0x44] sm:$0xf] }
  0x7e   : > { %2403 = vmatpush.bf16.msrb.mxu1 %v4401_v56  ;;  %2416 = vmatpush.bf16.msrb.mxu2 %v4529_v12  ;;  %v3938_v12 = vld [vmem:[#allocation4 + $0x190] sm:$0xf0]  ;;  %v5340_v17 = vld [vmem:[#allocation4 + $0x5e4] sm:$0xf] }
  0x7f   : > { %v5156_v19 = vld [vmem:[#allocation4 + $0x24] sm:$0xf] }
  0x80   : > { %v5332_v52 = vld [vmem:[#allocation4 + $0x5a4] sm:$0xf] }
  0x81   : > { %2426 = vmatpush.bf16.msra.mxu3 %v4705_v22 }
  0x82   : > { %2404 = vmatpush.bf16.msrb.mxu1 %v4385_v4  ;;  %2417 = vmatpush.bf16.msrb.mxu2 %v4513_v21  ;;  %v5240_v4 = vld [vmem:[#allocation4 + $0x2c4] sm:$0xf]  ;;  %v3941_v21 = vor.u32 %v5200_v11, %v3938_v12  ;;  %v4226_v11 = vld [vmem:[#allocation4 + $0x3d0] sm:$0xf0] }
  0x83   : > { %v4101_v15 = vor.u32 %v5240_v4, %v4098_v5 }
  0x85   : > { %2427 = vmatpush.bf16.msra.mxu3 %v4689_v25  ;;  %v5196_v25 = vld [vmem:[#allocation4 + $0x164] sm:$0xf] }
  0x89   : > { %2428 = vmatpush.bf16.msra.mxu3 %v4673_v28  ;;  %v489_v28 = vperm.slane %v5856_v32, 3 }
  0x8d   : > { %2429 = vmatpush.bf16.msra.mxu3 %v4657_v31 }
  0x91   : > { %2430 = vmatpush.bf16.msra.mxu3 %v4641_v35  ;;  %v4066_v35 = vld [vmem:[#allocation4 + $0x290] sm:$0xf0] }
  0x92   : > { %v4069_v47 = vor.u32 %v5232_v34, %v4066_v35  ;;  %v4482_v34 = vld [vmem:[#allocation4 + $0x5d0] sm:$0xf0]  ;;  %v5152_v35 = vld [vmem:[#allocation4 + $0x4] sm:$0xf] }
  0xb2   : > { %v688_v37 = vpop.f32.mrf.mxu1 }
  0xb3   : > { %v689_v38 = vadd.f32 %v688_v37, %v487_v36  ;;  %v3925_v36 = vor.u32 %v5196_v25, %v3922_v26  ;;  %v5268_v26 = vld [vmem:[#allocation4 + $0x3a4] sm:$0xf] }
  0xb5   : > { %v771_v42 = vmax.f32 %v689_v38, 0.0 }
  0xb7   : > { %v5861_v45 = vpack.c.bf16 %v771_v42, %v771_v42  ;;  %v675_v46 = vpop.f32.mrf.mxu3  ;;  %v5192_v42 = vld [vmem:[#allocation4 + $0x144] sm:$0xf] }
  0xb8   : > { %v676_v49 = vadd.f32 %v675_v46, %v486_v41  ;;  %v3813_v41 = vor.u32 %v5168_v29, %v3810_v30  ;;  %v493_v29 = vperm.slane %v5856_v32, 7  ;;  %v5336_v30 = vld [vmem:[#allocation4 + $0x5c4] sm:$0xf] }
  0xb9   : > { %2353 = vmatmul.bf16.vlgmr.msra.gmra.mxu1 %v5861_v45  ;;  %v4485_v32 = vor.u32 %v5336_v30, %v4482_v34  ;;  %v5360_v30 = vld [vmem:[#allocation4 + $0x684] sm:$0xf]  ;;  %v4418_v34 = vld [vmem:[#allocation4 + $0x550] sm:$0xf0] }
  0xba   : > { %v701_v51 = vpop.f32.mrf.mxu2  ;;  %v770_v56 = vmax.f32 %v676_v49, 0.0  ;;  %2449 = vmatpush.bf16.msra.mxu1 %v3989_v44  ;;  %v690_v57 = vpop.f32.mrf.mxu1 }
  0xbb   : > { %v702_v53 = vadd.f32 %v701_v51, %v488_v43  ;;  %v3906_v43 = vld [vmem:[#allocation4 + $0x150] sm:$0xf0] }
  0xbc   : > { %v5864_v63 = vpack.c.bf16 %v770_v56, %v770_v56  ;;  %v727_v7 = vpop.f32.mrf.mxu0  ;;  %v3794_v51 = vld [vmem:[#allocation4 + $0x70] sm:$0xf0]  ;;  %v3909_v54 = vor.u32 %v5192_v42, %v3906_v43  ;;  %v5308_v43 = vld [vmem:[#allocation4 + $0x4e4] sm:$0xf] }
  0xbd   : > { %v772_v59 = vmax.f32 %v702_v53, 0.0  ;;  %v728_v24 = vadd.f32 %v727_v7, %v490_v13  ;;  %v4242_v56 = vld [vmem:[#allocation4 + $0x3f0] sm:$0xf0]  ;;  %v5224_v7 = vld [vmem:[#allocation4 + $0x244] sm:$0xf] }
  0xbe   : > { %2450 = vmatpush.bf16.msra.mxu1 %v3973_v58  ;;  %2340 = vmatmul.bf16.vlgmr.msrb.gmra.mxu0 %v5864_v63  ;;  %v4245_v5 = vor.u32 %v5276_v55, %v4242_v56  ;;  %v5184_v13 = vld [vmem:[#allocation4 + $0x104] sm:$0xf]  ;;  %v4194_v42 = vld [vmem:[#allocation4 + $0x390] sm:$0xf0] }
  0xbf   : > { %v5866_v3 = vpack.c.bf16 %v772_v59, %v772_v59  ;;  %2436 = vmatpush.bf16.msrb.mxu0 %v3861_v60  ;;  %v677_v8 = vpop.f32.mrf.mxu3  ;;  %v774_v40 = vmax.f32 %v728_v24, 0.0  ;;  %v5188_v60 = vld [vmem:[#allocation4 + $0x124] sm:$0xf]  ;;  %v4018_v24 = vld [vmem:[#allocation4 + $0x230] sm:$0xf0] }
  0xc0   : > { %v4034_v8 = vld [vmem:[#allocation4 + $0x250] sm:$0xf0]  ;;  %v5260_v56 = vld [vmem:[#allocation4 + $0x364] sm:$0xf] }
  0xc1   : > { %2366 = vmatmul.bf16.vlgmr.msra.gmra.mxu2 %v5866_v3  ;;  %v5877_v58 = vpack.c.bf16 %v774_v40, %v774_v40  ;;  %v4037_v16 = vor.u32 %v5224_v7, %v4034_v8  ;;  %v4002_v40 = vld [vmem:[#allocation4 + $0x210] sm:$0xf0]  ;;  %v5328_v7 = vld [vmem:[#allocation4 + $0x584] sm:$0xf] }
  0xc2   : > { %2462 = vmatpush.bf16.msra.mxu2 %v4117_v0  ;;  %v703_v14 = vpop.f32.mrf.mxu2  ;;  %2451 = vmatpush.bf16.msra.mxu1 %v3957_v6  ;;  %v740_v20 = vpop.f32.mrf.mxu1  ;;  %v3797_v0 = vor.u32 %v5164_v48, %v3794_v51  ;;  %v3778_v6 = vld [vmem:[#allocation4 + $0x50] sm:$0xf0] }
  0xc3   : > { %v741_v22 = vadd.f32 %v740_v20, %v491_v9  ;;  %2437 = vmatpush.bf16.msrb.mxu0 %v3845_v10  ;;  %v3893_v9 = vor.u32 %v5188_v60, %v3890_v61  ;;  %v5272_v10 = vld [vmem:[#allocation4 + $0x3c4] sm:$0xf]  ;;  %v3874_v14 = vld [vmem:[#allocation4 + $0x110] sm:$0xf0] }
  0xc4   : > { %v729_v37 = vpop.f32.mrf.mxu0  ;;  %v3877_v25 = vor.u32 %v5184_v13, %v3874_v14  ;;  %v4626_v48 = vld [vmem:[#allocation4 + $0x6f0] sm:$0xf0]  ;;  %v5304_v61 = vld [vmem:[#allocation4 + $0x4c4] sm:$0xf] }
  0xc5   : > { %v775_v31 = vmax.f32 %v741_v22, 0.0  ;;  %v3762_v22 = vld [vmem:[#allocation4 + $0x30] sm:$0xf0]  ;;  %v5300_v14 = vld [vmem:[#allocation4 + $0x4a4] sm:$0xf] }
  0xc6   : > { %2463 = vmatpush.bf16.msra.mxu2 %v4101_v15  ;;  %2452 = vmatpush.bf16.msra.mxu1 %v3941_v21  ;;  %v3781_v15 = vor.u32 %v5160_v2, %v3778_v6  ;;  %v4229_v21 = vor.u32 %v5272_v10, %v4226_v11  ;;  %v5368_v2 = vld [vmem:[#allocation4 + $0x6c4] sm:$0xf]  ;;  %v4450_v8 = vld [vmem:[#allocation4 + $0x590] sm:$0xf0] }
  0xc7   : > { %v5874_v38 = vpack.c.bf16 %v775_v31, %v775_v31  ;;  %2438 = vmatpush.bf16.msrb.mxu0 %v3829_v23  ;;  %v714_v39 = vpop.f32.mrf.mxu3  ;;  %v5220_v23 = vld [vmem:[#allocation4 + $0x224] sm:$0xf]  ;;  %v3765_v31 = vor.u32 %v5156_v19, %v3762_v22  ;;  %v4162_v13 = vld [vmem:[#allocation4 + $0x350] sm:$0xf0] }
  0xc8   : > { %v715_v44 = vadd.f32 %v714_v39, %v489_v28  ;;  %v4501_v28 = vor.u32 %v5340_v17, %v4498_v18  ;;  %v5216_v39 = vld [vmem:[#allocation4 + $0x204] sm:$0xf]  ;;  %v4594_v18 = vld [vmem:[#allocation4 + $0x6b0] sm:$0xf0] }
  0xc9   : > { %2405 = vmatmul.bf16.vlgmr.msrb.gmra.mxu1 %v5874_v38  ;;  %v4005_v50 = vor.u32 %v5216_v39, %v4002_v40  ;;  %v5256_v11 = vld [vmem:[#allocation4 + $0x344] sm:$0xf]  ;;  %v4130_v39 = vld [vmem:[#allocation4 + $0x310] sm:$0xf0] }
  0xca   : > { %2464 = vmatpush.bf16.msra.mxu2 %v4085_v27  ;;  %v753_v46 = vpop.f32.mrf.mxu2  ;;  %v773_v53 = vmax.f32 %v715_v44, 0.0  ;;  %2453 = vmatpush.bf16.msra.mxu1 %v3925_v36  ;;  %v742_v57 = vpop.f32.mrf.mxu1  ;;  %v4210_v27 = vld [vmem:[#allocation4 + $0x3b0] sm:$0xf0]  ;;  %v5364_v17 = vld [vmem:[#allocation4 + $0x6a4] sm:$0xf]  ;;  %v4165_v22 = vor.u32 %v5256_v11, %v4162_v13 }
  0xcb   : > { %v754_v49 = vadd.f32 %v753_v46, %v492_v33  ;;  %2439 = vmatpush.bf16.msrb.mxu0 %v3813_v41  ;;  %v4021_v33 = vor.u32 %v5220_v23, %v4018_v24  ;;  %v3746_v36 = vld [vmem:[#allocation4 + $0x10] sm:$0xf0]  ;;  %v4213_v37 = vor.u32 %v5268_v26, %v4210_v27  ;;  %v5264_v41 = vld [vmem:[#allocation4 + $0x384] sm:$0xf] }
  0xcc   : > { %v5879_v62 = vpack.c.bf16 %v773_v53, %v773_v53  ;;  %v4370_v44 = vld [vmem:[#allocation4 + $0x4f0] sm:$0xf0]  ;;  %v3749_v51 = vor.u32 %v5152_v35, %v3746_v36  ;;  %v5252_v24 = vld [vmem:[#allocation4 + $0x324] sm:$0xf] }
  0xcd   : > { %v776_v59 = vmax.f32 %v754_v49, 0.0  ;;  %v4466_v53 = vld [vmem:[#allocation4 + $0x5b0] sm:$0xf0]  ;;  %v4373_v55 = vor.u32 %v5308_v43, %v4370_v44  ;;  %v5296_v27 = vld [vmem:[#allocation4 + $0x484] sm:$0xf] }
  0xce   : > { %2465 = vmatpush.bf16.msra.mxu2 %v4069_v47  ;;  %2454 = vmatpush.bf16.msra.mxu1 %v3909_v54  ;;  %v5372_v47 = vld [vmem:[#allocation4 + $0x6e4] sm:$0xf]  ;;  %v4197_v54 = vor.u32 %v5264_v41, %v4194_v42  ;;  %v4178_v57 = vld [vmem:[#allocation4 + $0x370] sm:$0xf0] }
  0xcf   : > { %v5881_v4 = vpack.c.bf16 %v776_v59, %v776_v59  ;;  %2379 = vmatmul.bf16.vlgmr.msrb.gmra.mxu3 %v5879_v62  ;;  %2392 = vmatmul.bf16.vlgmr.msra.gmra.mxu0 %v5877_v58  ;;  %v716_v12 = vpop.f32.mrf.mxu3  ;;  %v4629_v60 = vor.u32 %v5372_v47, %v4626_v48  ;;  %v4146_v26 = vld [vmem:[#allocation4 + $0x330] sm:$0xf0]  ;;  %v5292_v41 = vld [vmem:[#allocation4 + $0x464] sm:$0xf] }
  0xd0   : > { %2440 = vmatpush.bf16.msrb.mxu0 %v3797_v0  ;;  %2475 = vmatpush.bf16.msrb.mxu3 %v4245_v5  ;;  %v4354_v0 = vld [vmem:[#allocation4 + $0x4d0] sm:$0xf0]  ;;  %v4149_v35 = vor.u32 %v5252_v24, %v4146_v26  ;;  %v5356_v43 = vld [vmem:[#allocation4 + $0x664] sm:$0xf] }
  0xd1   : > { %2418 = vmatmul.bf16.vlgmr.msrb.gmra.mxu2 %v5881_v4  ;;  %v4610_v5 = vld [vmem:[#allocation4 + $0x6d0] sm:$0xf0]  ;;  %v4357_v10 = vor.u32 %v5304_v61, %v4354_v0  ;;  %v5316_v48 = vld [vmem:[#allocation4 + $0x524] sm:$0xf] }
  0xd2   : > { %2466 = vmatpush.bf16.msra.mxu2 %v4053_v1  ;;  %v755_v20 = vpop.f32.mrf.mxu2  ;;  %2455 = vmatpush.bf16.msra.mxu1 %v3893_v9  ;;  %v4469_v1 = vor.u32 %v5332_v52, %v4466_v53  ;;  %v4181_v9 = vor.u32 %v5260_v56, %v4178_v57  ;;  %v4613_v12 = vor.u32 %v5368_v2, %v4610_v5  ;;  %v4306_v42 = vld [vmem:[#allocation4 + $0x470] sm:$0xf0]  ;;  %v5352_v56 = vld [vmem:[#allocation4 + $0x644] sm:$0xf]  ;;  %v3992_v5 = vld [vmem:[#allocation4 + $0x1e8] sm:$0xf] }
  0xd3   : > { %v5324_v20 = vld [vmem:[#allocation4 + $0x564] sm:$0xf]  ;;  %v4754_v47 = vld [vmem:[#allocation4 + $0x7f0] sm:$0xf0] }
  0xd4   : > { %2441 = vmatpush.bf16.msrb.mxu0 %v3781_v15  ;;  %2476 = vmatpush.bf16.msrb.mxu3 %v4229_v21  ;;  %v4338_v15 = vld [vmem:[#allocation4 + $0x4b0] sm:$0xf0]  ;;  %v5312_v0 = vld [vmem:[#allocation4 + $0x504] sm:$0xf] }
  0xd5   : > { %v4434_v21 = vld [vmem:[#allocation4 + $0x570] sm:$0xf0]  ;;  %v4341_v23 = vor.u32 %v5300_v14, %v4338_v15  ;;  %v5396_v15 = vld [vmem:[#allocation4 + $0x7a4] sm:$0xf] }
  0xd6   : > { %2467 = vmatpush.bf16.msra.mxu2 %v4037_v16  ;;  %2456 = vmatpush.bf16.msra.mxu1 %v3877_v25  ;;  %v4453_v16 = vor.u32 %v5328_v7, %v4450_v8  ;;  %v4597_v25 = vor.u32 %v5364_v17, %v4594_v18  ;;  %v4738_v61 = vld [vmem:[#allocation4 + $0x7d0] sm:$0xf0]  ;;  %v5215_v7 = vld [vmem:[#allocation4 + $0x1f4] sm:$0xf0] }
  0xd7   : > { %v766_v46 = vpop.f32.mrf.mxu3  ;;  %v4274_v11 = vld [vmem:[#allocation4 + $0x430] sm:$0xf0]  ;;  %v3993_v17 = vor.u32 %v5215_v7, %v3992_v5 }
  0xd8   : > { %2442 = vmatpush.bf16.msrb.mxu0 %v3765_v31  ;;  %v767_v49 = vadd.f32 %v766_v46, %v493_v29  ;;  %2477 = vmatpush.bf16.msrb.mxu3 %v4213_v37  ;;  %v4437_v29 = vor.u32 %v5324_v20, %v4434_v21  ;;  %v4578_v31 = vld [vmem:[#allocation4 + $0x690] sm:$0xf0]  ;;  %v5248_v37 = vld [vmem:[#allocation4 + $0x304] sm:$0xf]  ;;  %v5211_v20 = vld [vmem:[#allocation4 + $0x1d4] sm:$0xf0] }
  0xd9   : > { %2457 = vmatmul.bf16.vlgmr.msra.gmra.mxu1 %v5861_v45  ;;  %v4581_v40 = vor.u32 %v5360_v30, %v4578_v31  ;;  %v4562_v46 = vld [vmem:[#allocation4 + $0x670] sm:$0xf0]  ;;  %v5280_v21 = vld [vmem:[#allocation4 + $0x404] sm:$0xf]  ;;  %v5183_v31 = vld [vmem:[#allocation4 + $0xf4] sm:$0xf0] }
  0xda   : > { %2501 = vmatpush.bf16.msrb.mxu1 %v4501_v28  ;;  %2468 = vmatpush.bf16.msra.mxu2 %v4021_v33  ;;  %v777_v59 = vmax.f32 %v767_v49, 0.0  ;;  %v4322_v28 = vld [vmem:[#allocation4 + $0x490] sm:$0xf0]  ;;  %v5320_v33 = vld [vmem:[#allocation4 + $0x544] sm:$0xf]  ;;  %v4565_v52 = vor.u32 %v5356_v43, %v4562_v46 }
  0xdb   : > { %v4325_v36 = vor.u32 %v5296_v27, %v4322_v28  ;;  %v4421_v44 = vor.u32 %v5320_v33, %v4418_v34  ;;  %v4402_v49 = vld [vmem:[#allocation4 + $0x530] sm:$0xf0]  ;;  %v5392_v27 = vld [vmem:[#allocation4 + $0x784] sm:$0xf]  ;;  %v4120_v33 = vld [vmem:[#allocation4 + $0x2e8] sm:$0xf] }
  0xdc   : > { %v5888_v6 = vpack.c.bf16 %v777_v59, %v777_v59  ;;  %2443 = vmatpush.bf16.msrb.mxu0 %v3749_v51  ;;  %2478 = vmatpush.bf16.msrb.mxu3 %v4197_v54  ;;  %v4133_v51 = vor.u32 %v5248_v37, %v4130_v39  ;;  %v5288_v54 = vld [vmem:[#allocation4 + $0x444] sm:$0xf]  ;;  %v4405_v57 = vor.u32 %v5316_v48, %v4402_v49  ;;  %v4546_v59 = vld [vmem:[#allocation4 + $0x650] sm:$0xf0]  ;;  %v5247_v34 = vld [vmem:[#allocation4 + $0x2f4] sm:$0xf0] }
  0xdd   : > { %v4549_v8 = vor.u32 %v5352_v56, %v4546_v59  ;;  %v4530_v14 = vld [vmem:[#allocation4 + $0x630] sm:$0xf0]  ;;  %v5207_v37 = vld [vmem:[#allocation4 + $0x1b4] sm:$0xf0]  ;;  %v5388_v43 = vld [vmem:[#allocation4 + $0x764] sm:$0xf] }
  0xde   : > { %2502 = vmatpush.bf16.msrb.mxu1 %v4485_v32  ;;  %2469 = vmatpush.bf16.msra.mxu2 %v4005_v50  ;;  %v5404_v32 = vld [vmem:[#allocation4 + $0x7e4] sm:$0xf]  ;;  %v4309_v50 = vor.u32 %v5292_v41, %v4306_v42  ;;  %v4258_v24 = vld [vmem:[#allocation4 + $0x410] sm:$0xf0]  ;;  %v4121_v42 = vor.u32 %v5247_v34, %v4120_v33  ;;  %v3848_v46 = vld [vmem:[#allocation4 + $0xc8] sm:$0xf] }
  0xdf   : > { %2431 = vmatmul.bf16.vlgmr.msra.gmra.mxu3 %v5888_v6  ;;  %2444 = vmatmul.bf16.vlgmr.msrb.gmra.mxu0 %v5864_v63  ;;  %v768_v19 = vpop.f32.mrf.mxu3  ;;  %v4757_v53 = vor.u32 %v5404_v32, %v4754_v47  ;;  %v4514_v26 = vld [vmem:[#allocation4 + $0x610] sm:$0xf0]  ;;  %v5179_v47 = vld [vmem:[#allocation4 + $0xd4] sm:$0xf0]  ;;  %v4104_v48 = vld [vmem:[#allocation4 + $0x2c8] sm:$0xf] }
  0xe0   : > { %2488 = vmatpush.bf16.msra.mxu0 %v4373_v55  ;;  %2479 = vmatpush.bf16.msrb.mxu3 %v4181_v9  ;;  %v4290_v55 = vld [vmem:[#allocation4 + $0x450] sm:$0xf0]  ;;  %v3976_v19 = vld [vmem:[#allocation4 + $0x1c8] sm:$0xf]  ;;  %v5243_v49 = vld [vmem:[#allocation4 + $0x2d4] sm:$0xf0] }
  0xe1   : > { %2470 = vmatmul.bf16.vlgmr.msra.gmra.mxu2 %v5866_v3  ;;  %v4293_v2 = vor.u32 %v5288_v54, %v4290_v55  ;;  %v4706_v28 = vld [vmem:[#allocation4 + $0x790] sm:$0xf0]  ;;  %v3977_v30 = vor.u32 %v5211_v20, %v3976_v19  ;;  %v4105_v54 = vor.u32 %v5243_v49, %v4104_v48  ;;  %v5384_v55 = vld [vmem:[#allocation4 + $0x744] sm:$0xf]  ;;  %v5343_v48 = vld [vmem:[#allocation4 + $0x5f4] sm:$0xf0] }
  0xe2   : > { %2514 = vmatpush.bf16.msrb.mxu2 %v4629_v60  ;;  %2503 = vmatpush.bf16.msrb.mxu1 %v4469_v1  ;;  %v5400_v60 = vld [vmem:[#allocation4 + $0x7c4] sm:$0xf]  ;;  %v4386_v1 = vld [vmem:[#allocation4 + $0x510] sm:$0xf0] }
  0xe3   : > { %v4741_v9 = vor.u32 %v5400_v60, %v4738_v61  ;;  %v4389_v13 = vor.u32 %v5312_v0, %v4386_v1  ;;  %v4674_v56 = vld [vmem:[#allocation4 + $0x750] sm:$0xf0]  ;;  %v5175_v60 = vld [vmem:[#allocation4 + $0xb4] sm:$0xf0]  ;;  %v4088_v61 = vld [vmem:[#allocation4 + $0x2a8] sm:$0xf] }
  0xe4   : > { %2489 = vmatpush.bf16.msra.mxu0 %v4357_v10  ;;  %2480 = vmatpush.bf16.msrb.mxu3 %v4165_v22  ;;  %v5284_v10 = vld [vmem:[#allocation4 + $0x424] sm:$0xf]  ;;  %v5239_v0 = vld [vmem:[#allocation4 + $0x2b4] sm:$0xf0]  ;;  %v3928_v1 = vld [vmem:[#allocation4 + $0x168] sm:$0xf]  ;;  %v4677_v5 = vor.u32 %v5384_v55, %v4674_v56 }
  0xe5   : > { %v4277_v18 = vor.u32 %v5284_v10, %v4274_v11  ;;  %v4658_v10 = vld [vmem:[#allocation4 + $0x730] sm:$0xf0]  ;;  %v3816_v11 = vld [vmem:[#allocation4 + $0x88] sm:$0xf]  ;;  %v5376_v19 = vld [vmem:[#allocation4 + $0x704] sm:$0xf] }
  0xe6   : > { %2515 = vmatpush.bf16.msrb.mxu2 %v4613_v12  ;;  %2504 = vmatpush.bf16.msrb.mxu1 %v4453_v16  ;;  %v5348_v12 = vld [vmem:[#allocation4 + $0x624] sm:$0xf]  ;;  %v4722_v16 = vld [vmem:[#allocation4 + $0x7b0] sm:$0xf0]  ;;  %v4024_v55 = vld [vmem:[#allocation4 + $0x228] sm:$0xf] }
  0xe7   : > { %v4533_v22 = vor.u32 %v5348_v12, %v4530_v14  ;;  %v4072_v14 = vld [vmem:[#allocation4 + $0x288] sm:$0xf]  ;;  %v5223_v56 = vld [vmem:[#allocation4 + $0x234] sm:$0xf0] }
  0xe8   : > { %2490 = vmatpush.bf16.msra.mxu0 %v4341_v23  ;;  %2481 = vmatpush.bf16.msrb.mxu3 %v4149_v35  ;;  %v4725_v23 = vor.u32 %v5396_v15, %v4722_v16  ;;  %v4261_v35 = vor.u32 %v5280_v21, %v4258_v24  ;;  %v5235_v15 = vld [vmem:[#allocation4 + $0x294] sm:$0xf0]  ;;  %v3912_v16 = vld [vmem:[#allocation4 + $0x148] sm:$0xf] }
  0xe9   : > { %v4073_v21 = vor.u32 %v5235_v15, %v4072_v14  ;;  %v5167_v24 = vld [vmem:[#allocation4 + $0x74] sm:$0xf0]  ;;  %v4376_v14 = vld [vmem:[#allocation4 + $0x4e8] sm:$0xf] }
  0xea   : > { %2516 = vmatpush.bf16.msrb.mxu2 %v4597_v25  ;;  %2505 = vmatpush.bf16.msrb.mxu1 %v4437_v29  ;;  %v5344_v25 = vld [vmem:[#allocation4 + $0x604] sm:$0xf]  ;;  %v3864_v29 = vld [vmem:[#allocation4 + $0xe8] sm:$0xf]  ;;  %v5311_v15 = vld [vmem:[#allocation4 + $0x4f4] sm:$0xf0] }
  0xeb   : > { %v4517_v39 = vor.u32 %v5344_v25, %v4514_v26  ;;  %v3865_v41 = vor.u32 %v5183_v31, %v3864_v29  ;;  %v4056_v26 = vld [vmem:[#allocation4 + $0x268] sm:$0xf]  ;;  %v5279_v29 = vld [vmem:[#allocation4 + $0x3f4] sm:$0xf0] }
  0xec   : > { %2491 = vmatpush.bf16.msra.mxu0 %v4325_v36  ;;  %2482 = vmatpush.bf16.msrb.mxu3 %v4133_v51  ;;  %v3960_v36 = vld [vmem:[#allocation4 + $0x1a8] sm:$0xf]  ;;  %v5191_v31 = vld [vmem:[#allocation4 + $0x134] sm:$0xf0] }
  0xed   : > { %v3961_v32 = vor.u32 %v5207_v37, %v3960_v36  ;;  %v3944_v51 = vld [vmem:[#allocation4 + $0x188] sm:$0xf]  ;;  %v5163_v37 = vld [vmem:[#allocation4 + $0x54] sm:$0xf0] }
  0xee   : > { %2517 = vmatpush.bf16.msrb.mxu2 %v4581_v40  ;;  %2506 = vmatpush.bf16.msrb.mxu1 %v4421_v44  ;;  %v4709_v40 = vor.u32 %v5392_v27, %v4706_v28  ;;  %v4690_v44 = vld [vmem:[#allocation4 + $0x770] sm:$0xf0]  ;;  %v5231_v27 = vld [vmem:[#allocation4 + $0x274] sm:$0xf0]  ;;  %v4248_v28 = vld [vmem:[#allocation4 + $0x3e8] sm:$0xf] }
  0xef   : > { %2483 = vmatmul.bf16.vlgmr.msrb.gmra.mxu3 %v5879_v62  ;;  %v3784_v36 = vld [vmem:[#allocation4 + $0x48] sm:$0xf] }
  0xf0   : > { %2492 = vmatpush.bf16.msra.mxu0 %v4309_v50  ;;  %2527 = vmatpush.bf16.msra.mxu3 %v4757_v53  ;;  %v5203_v50 = vld [vmem:[#allocation4 + $0x194] sm:$0xf0]  ;;  %v3849_v53 = vor.u32 %v5179_v47, %v3848_v46  ;;  %v3880_v46 = vld [vmem:[#allocation4 + $0x108] sm:$0xf]  ;;  %v3785_v49 = vor.u32 %v5163_v37, %v3784_v36 }
  0xf1   : > { %v3945_v59 = vor.u32 %v5203_v50, %v3944_v51  ;;  %v4504_v47 = vld [vmem:[#allocation4 + $0x5e8] sm:$0xf] }
  0xf2   : > { %2518 = vmatpush.bf16.msrb.mxu2 %v4565_v52  ;;  %2507 = vmatpush.bf16.msrb.mxu1 %v4405_v57  ;;  %v4693_v52 = vor.u32 %v5388_v43, %v4690_v44  ;;  %v3832_v57 = vld [vmem:[#allocation4 + $0xa8] sm:$0xf]  ;;  %v5275_v44 = vld [vmem:[#allocation4 + $0x3d4] sm:$0xf0] }
  0xf3   : > { %v3833_v7 = vor.u32 %v5175_v60, %v3832_v57  ;;  %v4232_v43 = vld [vmem:[#allocation4 + $0x3c8] sm:$0xf]  ;;  %v4505_v57 = vor.u32 %v5343_v48, %v4504_v47  ;;  %v5271_v60 = vld [vmem:[#allocation4 + $0x3b4] sm:$0xf0] }
  0xf4   : > { %2493 = vmatpush.bf16.msra.mxu0 %v4293_v2  ;;  %2528 = vmatpush.bf16.msra.mxu3 %v4741_v9  ;;  %v5199_v2 = vld [vmem:[#allocation4 + $0x174] sm:$0xf0]  ;;  %v5380_v9 = vld [vmem:[#allocation4 + $0x724] sm:$0xf]  ;;  %v3768_v50 = vld [vmem:[#allocation4 + $0x28] sm:$0xf] }
  0xf5   : > { %v3929_v12 = vor.u32 %v5199_v2, %v3928_v1  ;;  %v4025_v2 = vor.u32 %v5223_v56, %v4024_v55  ;;  %v4168_v37 = vld [vmem:[#allocation4 + $0x348] sm:$0xf]  ;;  %v5327_v47 = vld [vmem:[#allocation4 + $0x574] sm:$0xf0] }
  0xf6   : > { %2519 = vmatpush.bf16.msrb.mxu2 %v4549_v8  ;;  %2508 = vmatpush.bf16.msrb.mxu1 %v4389_v13  ;;  %v4089_v8 = vor.u32 %v5239_v0, %v4088_v61  ;;  %v5171_v13 = vld [vmem:[#allocation4 + $0x94] sm:$0xf0]  ;;  %v4488_v61 = vld [vmem:[#allocation4 + $0x5c8] sm:$0xf] }
  0xf7   : > { %v3817_v20 = vor.u32 %v5171_v13, %v3816_v11  ;;  %v5339_v0 = vld [vmem:[#allocation4 + $0x5d4] sm:$0xf0]  ;;  %v4200_v11 = vld [vmem:[#allocation4 + $0x388] sm:$0xf] }
  0xf8   : > { %2494 = vmatpush.bf16.msra.mxu0 %v4277_v18  ;;  %2529 = vmatpush.bf16.msra.mxu3 %v4725_v23  ;;  %v4661_v18 = vor.u32 %v5380_v9, %v4658_v10  ;;  %v3800_v23 = vld [vmem:[#allocation4 + $0x68] sm:$0xf]  ;;  %v5219_v10 = vld [vmem:[#allocation4 + $0x214] sm:$0xf0]  ;;  %v4489_v13 = vor.u32 %v5339_v0, %v4488_v61 }
  0xf9   : > { %2509 = vmatmul.bf16.vlgmr.msrb.gmra.mxu1 %v5874_v38  ;;  %v3801_v34 = vor.u32 %v5167_v24, %v3800_v23  ;;  %v4377_v23 = vor.u32 %v5311_v15, %v4376_v14  ;;  %v4184_v24 = vld [vmem:[#allocation4 + $0x368] sm:$0xf]  ;;  %v5299_v55 = vld [vmem:[#allocation4 + $0x494] sm:$0xf0] }
  0xfa   : > { %2553 = vmatpush.bf16.msra.mxu1 %v3993_v17  ;;  %2520 = vmatpush.bf16.msrb.mxu2 %v4533_v22  ;;  %v5195_v17 = vld [vmem:[#allocation4 + $0x154] sm:$0xf0]  ;;  %v4642_v22 = vld [vmem:[#allocation4 + $0x710] sm:$0xf0]  ;;  %v4584_v56 = vld [vmem:[#allocation4 + $0x688] sm:$0xf] }
  0xfb   : > { %v3913_v25 = vor.u32 %v5195_v17, %v3912_v16  ;;  %v4645_v33 = vor.u32 %v5376_v19, %v4642_v22  ;;  %v4632_v16 = vld [vmem:[#allocation4 + $0x6e8] sm:$0xf]  ;;  %v5375_v17 = vld [vmem:[#allocation4 + $0x6f4] sm:$0xf0] }
  0xfc   : > { %2495 = vmatpush.bf16.msra.mxu0 %v4261_v35  ;;  %2530 = vmatpush.bf16.msra.mxu3 %v4709_v40  ;;  %v4057_v35 = vor.u32 %v5231_v27, %v4056_v26  ;;  %v5335_v19 = vld [vmem:[#allocation4 + $0x5b4] sm:$0xf0]  ;;  %v4633_v26 = vor.u32 %v5375_v17, %v4632_v16  ;;  %v4408_v14 = vld [vmem:[#allocation4 + $0x528] sm:$0xf] }
  0xfd   : > { %v5319_v15 = vld [vmem:[#allocation4 + $0x534] sm:$0xf0] }
  0xfe   : > { %2554 = vmatpush.bf16.msra.mxu1 %v3977_v30  ;;  %2521 = vmatpush.bf16.msrb.mxu2 %v4517_v39  ;;  %v3896_v30 = vld [vmem:[#allocation4 + $0x128] sm:$0xf]  ;;  %v4249_v39 = vor.u32 %v5279_v29, %v4248_v28  ;;  %v5307_v29 = vld [vmem:[#allocation4 + $0x4d4] sm:$0xf0] }
  0xff   : > { %2496 = vmatmul.bf16.vlgmr.msra.gmra.mxu0 %v5877_v58  ;;  %v3897_v40 = vor.u32 %v5191_v31, %v3896_v30  ;;  %v4360_v28 = vld [vmem:[#allocation4 + $0x4c8] sm:$0xf]  ;;  %v5371_v31 = vld [vmem:[#allocation4 + $0x6d4] sm:$0xf0] }
 0x100   : > { %2540 = vmatpush.bf16.msrb.mxu0 %v3865_v41  ;;  %2531 = vmatpush.bf16.msra.mxu3 %v4693_v52  ;;  %v4040_v41 = vld [vmem:[#allocation4 + $0x248] sm:$0xf]  ;;  %v4233_v52 = vor.u32 %v5275_v44, %v4232_v43  ;;  %v4361_v36 = vor.u32 %v5307_v29, %v4360_v28  ;;  %v5303_v43 = vld [vmem:[#allocation4 + $0x4b4] sm:$0xf0] }
 0x101   : > { %2522 = vmatmul.bf16.vlgmr.msrb.gmra.mxu2 %v5881_v4  ;;  %v4616_v30 = vld [vmem:[#allocation4 + $0x6c8] sm:$0xf]  ;;  %v5315_v28 = vld [vmem:[#allocation4 + $0x514] sm:$0xf0] }
 0x102   : > { %2566 = vmatpush.bf16.msra.mxu2 %v4121_v42  ;;  %2555 = vmatpush.bf16.msra.mxu1 %v3961_v32  ;;  %v5227_v42 = vld [vmem:[#allocation4 + $0x254] sm:$0xf0]  ;;  %v4600_v44 = vld [vmem:[#allocation4 + $0x6a8] sm:$0xf] }
 0x103   : > { %v5187_v32 = vld [vmem:[#allocation4 + $0x114] sm:$0xf0]  ;;  %v4041_v51 = vor.u32 %v5227_v42, %v4040_v41  ;;  %v4344_v42 = vld [vmem:[#allocation4 + $0x4a8] sm:$0xf] }
 0x104   : > { %2541 = vmatpush.bf16.msrb.mxu0 %v3849_v53  ;;  %2532 = vmatpush.bf16.msra.mxu3 %v4677_v5  ;;  %v3881_v53 = vor.u32 %v5187_v32, %v3880_v46  ;;  %v3752_v5 = vld [vmem:[#allocation4 + $0x8] sm:$0xf]  ;;  %v5367_v46 = vld [vmem:[#allocation4 + $0x6b4] sm:$0xf0] }
 0x105   : > { %v4440_v32 = vld [vmem:[#allocation4 + $0x568] sm:$0xf] }
 0x106   : > { %2567 = vmatpush.bf16.msra.mxu2 %v4105_v54  ;;  %2556 = vmatpush.bf16.msra.mxu1 %v3945_v59  ;;  %v5159_v54 = vld [vmem:[#allocation4 + $0x34] sm:$0xf0]  ;;  %v4216_v59 = vld [vmem:[#allocation4 + $0x3a8] sm:$0xf] }
 0x107   : > { %v3769_v1 = vor.u32 %v5159_v54, %v3768_v50  ;;  %v4217_v9 = vor.u32 %v5271_v60, %v4216_v59  ;;  %v5255_v50 = vld [vmem:[#allocation4 + $0x334] sm:$0xf0]  ;;  %v4328_v54 = vld [vmem:[#allocation4 + $0x488] sm:$0xf] }
 0x108   : > { %2542 = vmatpush.bf16.msrb.mxu0 %v3833_v7  ;;  %2533 = vmatpush.bf16.msra.mxu3 %v4661_v18  ;;  %v5155_v7 = vld [vmem:[#allocation4 + $0x14] sm:$0xf0]  ;;  %v4472_v18 = vld [vmem:[#allocation4 + $0x5a8] sm:$0xf]  ;;  %v4329_v0 = vor.u32 %v5299_v55, %v4328_v54  ;;  %v5181_v55 = vld [vmem:[#allocation4 + $0xec] sm:$0xf] }
 0x109   : > { %v4473_v27 = vor.u32 %v5335_v19, %v4472_v18  ;;  %v4424_v59 = vld [vmem:[#allocation4 + $0x548] sm:$0xf]  ;;  %v5323_v60 = vld [vmem:[#allocation4 + $0x554] sm:$0xf0] }
 0x10a   : > { %2568 = vmatpush.bf16.msra.mxu2 %v4089_v8  ;;  %2557 = vmatpush.bf16.msra.mxu1 %v3929_v12  ;;  %v4008_v8 = vld [vmem:[#allocation4 + $0x208] sm:$0xf]  ;;  %v5267_v12 = vld [vmem:[#allocation4 + $0x394] sm:$0xf0] }
 0x10b   : > { %v4201_v22 = vor.u32 %v5267_v12, %v4200_v11  ;;  %v5359_v11 = vld [vmem:[#allocation4 + $0x674] sm:$0xf0]  ;;  %v4760_v12 = vld [vmem:[#allocation4 + $0x7e8] sm:$0xf] }
 0x10c   : > { %2543 = vmatpush.bf16.msrb.mxu0 %v3817_v20  ;;  %2534 = vmatpush.bf16.msra.mxu3 %v4645_v33  ;;  %v3753_v20 = vor.u32 %v5155_v7, %v3752_v5  ;;  %v4456_v33 = vld [vmem:[#allocation4 + $0x588] sm:$0xf]  ;;  %v4425_v7 = vor.u32 %v5323_v60, %v4424_v59  ;;  %v5395_v54 = vld [vmem:[#allocation4 + $0x794] sm:$0xf0]  ;;  %v5245_v59 = vld [vmem:[#allocation4 + $0x2ec] sm:$0xf] }
 0x10d   : > { %v4122_v60 = vld [vmem:[#allocation4 + $0x2f8] sm:$0xf0] }
 0x10e   : > { %2569 = vmatpush.bf16.msra.mxu2 %v4073_v21  ;;  %2558 = vmatpush.bf16.msra.mxu1 %v3913_v25  ;;  %v4009_v21 = vor.u32 %v5219_v10, %v4008_v8  ;;  %v5263_v25 = vld [vmem:[#allocation4 + $0x374] sm:$0xf0]  ;;  %v4312_v8 = vld [vmem:[#allocation4 + $0x468] sm:$0xf] }
 0x10f   : > { %2535 = vmatmul.bf16.vlgmr.msra.gmra.mxu3 %v5888_v6  ;;  %v4568_v10 = vld [vmem:[#allocation4 + $0x668] sm:$0xf] }
 0x110   : > { %2544 = vmatpush.bf16.msrb.mxu0 %v3801_v34  ;;  %2579 = vmatpush.bf16.msrb.mxu3 %v4249_v39  ;;  %v5331_v34 = vld [vmem:[#allocation4 + $0x594] sm:$0xf0]  ;;  %v4569_v18 = vor.u32 %v5359_v11, %v4568_v10  ;;  %v5177_v11 = vld [vmem:[#allocation4 + $0xcc] sm:$0xf] }
 0x111   : > { %v5259_v39 = vld [vmem:[#allocation4 + $0x354] sm:$0xf0]  ;;  %v4457_v41 = vor.u32 %v5331_v34, %v4456_v33 }
 0x112   : > { %2570 = vmatpush.bf16.msra.mxu2 %v4057_v35  ;;  %2559 = vmatpush.bf16.msra.mxu1 %v3897_v40  ;;  %v4185_v35 = vor.u32 %v5263_v25, %v4184_v24  ;;  %v4617_v40 = vor.u32 %v5371_v31, %v4616_v30  ;;  %v4169_v48 = vor.u32 %v5259_v39, %v4168_v37  ;;  %v5355_v24 = vld [vmem:[#allocation4 + $0x654] sm:$0xf0]  ;;  %v4744_v25 = vld [vmem:[#allocation4 + $0x7c8] sm:$0xf]  ;;  %v5213_v30 = vld [vmem:[#allocation4 + $0x1ec] sm:$0xf] }
 0x113   : > { %v3994_v31 = vld [vmem:[#allocation4 + $0x1f8] sm:$0xf0]  ;;  %v4536_v37 = vld [vmem:[#allocation4 + $0x628] sm:$0xf]  ;;  %v5391_v10 = vld [vmem:[#allocation4 + $0x774] sm:$0xf0] }
 0x114   : > { %2545 = vmatpush.bf16.msrb.mxu0 %v3785_v49  ;;  %2580 = vmatpush.bf16.msrb.mxu3 %v4233_v52  ;;  %v4345_v49 = vor.u32 %v5303_v43, %v4344_v42  ;;  %v4601_v52 = vor.u32 %v5367_v46, %v4600_v44  ;;  %v5399_v42 = vld [vmem:[#allocation4 + $0x7b4] sm:$0xf0]  ;;  %v3997_v43 = vor.u32 %v5213_v30, %v3994_v31  ;;  %v5209_v46 = vld [vmem:[#allocation4 + $0x1cc] sm:$0xf] }
 0x115   : > { %v5197_v31 = vld [vmem:[#allocation4 + $0x16c] sm:$0xf] }
 0x116   : > { %2571 = vmatpush.bf16.msra.mxu2 %v4041_v51  ;;  %2560 = vmatpush.bf16.msra.mxu1 %v3881_v53  ;;  %v4152_v51 = vld [vmem:[#allocation4 + $0x328] sm:$0xf]  ;;  %v4441_v53 = vor.u32 %v5327_v47, %v4440_v32  ;;  %v3978_v32 = vld [vmem:[#allocation4 + $0x1d8] sm:$0xf0] }
 0x117   : > { %v4153_v61 = vor.u32 %v5255_v50, %v4152_v51  ;;  %v4264_v47 = vld [vmem:[#allocation4 + $0x408] sm:$0xf]  ;;  %v5283_v51 = vld [vmem:[#allocation4 + $0x414] sm:$0xf0] }
 0x118   : > { %2546 = vmatpush.bf16.msrb.mxu0 %v3769_v1  ;;  %2581 = vmatpush.bf16.msrb.mxu3 %v4217_v9  ;;  %v4136_v1 = vld [vmem:[#allocation4 + $0x308] sm:$0xf]  ;;  %v5295_v9 = vld [vmem:[#allocation4 + $0x474] sm:$0xf0] }
 0x119   : > { %2561 = vmatmul.bf16.vlgmr.msra.gmra.mxu1 %v5861_v45  ;;  %v4313_v17 = vor.u32 %v5295_v9, %v4312_v8  ;;  %v4520_v50 = vld [vmem:[#allocation4 + $0x608] sm:$0xf]  ;;  %v4125_v8 = vor.u32 %v5245_v59, %v4122_v60  ;;  %v5229_v60 = vld [vmem:[#allocation4 + $0x26c] sm:$0xf] }
 0x11a   : > { %2605 = vmatpush.bf16.msrb.mxu1 %v4505_v57  ;;  %2572 = vmatpush.bf16.msra.mxu2 %v4025_v2  ;;  %v5363_v57 = vld [vmem:[#allocation4 + $0x694] sm:$0xf0]  ;;  %v4696_v9 = vld [vmem:[#allocation4 + $0x768] sm:$0xf] }
 0x11b   : > { %v5251_v2 = vld [vmem:[#allocation4 + $0x314] sm:$0xf0]  ;;  %v4585_v5 = vor.u32 %v5363_v57, %v4584_v56  ;;  %v3981_v56 = vor.u32 %v5209_v46, %v3978_v32  ;;  %v3866_v57 = vld [vmem:[#allocation4 + $0xf8] sm:$0xf0] }
 0x11c   : > { %2547 = vmatpush.bf16.msrb.mxu0 %v3753_v20  ;;  %2582 = vmatpush.bf16.msrb.mxu3 %v4201_v22  ;;  %v4137_v16 = vor.u32 %v5251_v2, %v4136_v1  ;;  %v4296_v20 = vld [vmem:[#allocation4 + $0x448] sm:$0xf]  ;;  %v3962_v1 = vld [vmem:[#allocation4 + $0x1b8] sm:$0xf0] }
 0x11d   : > { %v4552_v22 = vld [vmem:[#allocation4 + $0x648] sm:$0xf]  ;;  %v4074_v46 = vld [vmem:[#allocation4 + $0x298] sm:$0xf0] }
 0x11e   : > { %2606 = vmatpush.bf16.msrb.mxu1 %v4489_v13  ;;  %2573 = vmatpush.bf16.msra.mxu2 %v4009_v21  ;;  %v5407_v13 = vld [vmem:[#allocation4 + $0x7f4] sm:$0xf0]  ;;  %v4553_v33 = vor.u32 %v5355_v24, %v4552_v22 }
 0x11f   : > { %2548 = vmatmul.bf16.vlgmr.msrb.gmra.mxu0 %v5864_v63  ;;  %v4761_v19 = vor.u32 %v5407_v13, %v4760_v12  ;;  %v5291_v21 = vld [vmem:[#allocation4 + $0x454] sm:$0xf0]  ;;  %v3850_v13 = vld [vmem:[#allocation4 + $0xd8] sm:$0xf0] }
 0x120   : > { %2592 = vmatpush.bf16.msra.mxu0 %v4377_v23  ;;  %2583 = vmatpush.bf16.msrb.mxu3 %v4185_v35  ;;  %v4409_v23 = vor.u32 %v5319_v15, %v4408_v14  ;;  %v4297_v29 = vor.u32 %v5291_v21, %v4296_v20  ;;  %v4280_v35 = vld [vmem:[#allocation4 + $0x428] sm:$0xf]  ;;  %v5241_v14 = vld [vmem:[#allocation4 + $0x2cc] sm:$0xf]  ;;  %v4106_v15 = vld [vmem:[#allocation4 + $0x2d8] sm:$0xf0]  ;;  %v3853_v21 = vor.u32 %v5177_v11, %v3850_v13 }
 0x121   : > { %2574 = vmatmul.bf16.vlgmr.msra.gmra.mxu2 %v5866_v3  ;;  %v4109_v22 = vor.u32 %v5241_v14, %v4106_v15  ;;  %v5387_v24 = vld [vmem:[#allocation4 + $0x754] sm:$0xf0]  ;;  %v5161_v11 = vld [vmem:[#allocation4 + $0x4c] sm:$0xf] }
 0x122   : > { %2618 = vmatpush.bf16.msrb.mxu2 %v4633_v26  ;;  %2607 = vmatpush.bf16.msrb.mxu1 %v4473_v27  ;;  %v5403_v26 = vld [vmem:[#allocation4 + $0x7d4] sm:$0xf0]  ;;  %v4392_v27 = vld [vmem:[#allocation4 + $0x508] sm:$0xf] }
 0x123   : > { %v4745_v34 = vor.u32 %v5403_v26, %v4744_v25  ;;  %v4393_v39 = vor.u32 %v5315_v28, %v4392_v27  ;;  %v5173_v25 = vld [vmem:[#allocation4 + $0xac] sm:$0xf]  ;;  %v3834_v27 = vld [vmem:[#allocation4 + $0xb8] sm:$0xf0] }
 0x124   : > { %2593 = vmatpush.bf16.msra.mxu0 %v4361_v36  ;;  %2584 = vmatpush.bf16.msrb.mxu3 %v4169_v48  ;;  %v5287_v36 = vld [vmem:[#allocation4 + $0x434] sm:$0xf0]  ;;  %v5237_v28 = vld [vmem:[#allocation4 + $0x2ac] sm:$0xf] }
 0x125   : > { %v4281_v44 = vor.u32 %v5287_v36, %v4280_v35  ;;  %v3837_v35 = vor.u32 %v5173_v25, %v3834_v27 }
 0x126   : > { %2619 = vmatpush.bf16.msrb.mxu2 %v4617_v40  ;;  %2608 = vmatpush.bf16.msrb.mxu1 %v4457_v41  ;;  %v5351_v40 = vld [vmem:[#allocation4 + $0x634] sm:$0xf0]  ;;  %v4728_v41 = vld [vmem:[#allocation4 + $0x7a8] sm:$0xf] }
 0x127   : > { %v4537_v48 = vor.u32 %v5351_v40, %v4536_v37  ;;  %v4664_v37 = vld [vmem:[#allocation4 + $0x728] sm:$0xf]  ;;  %v5169_v40 = vld [vmem:[#allocation4 + $0x8c] sm:$0xf] }
 0x128   : > { %2594 = vmatpush.bf16.msra.mxu0 %v4345_v49  ;;  %2585 = vmatpush.bf16.msrb.mxu3 %v4153_v61  ;;  %v4729_v49 = vor.u32 %v5399_v42, %v4728_v41  ;;  %v4265_v61 = vor.u32 %v5283_v51, %v4264_v47  ;;  %v5193_v47 = vld [vmem:[#allocation4 + $0x14c] sm:$0xf]  ;;  %v4648_v51 = vld [vmem:[#allocation4 + $0x708] sm:$0xf] }
 0x12a   : > { %2620 = vmatpush.bf16.msrb.mxu2 %v4601_v52  ;;  %2609 = vmatpush.bf16.msrb.mxu1 %v4441_v53  ;;  %v5347_v52 = vld [vmem:[#allocation4 + $0x614] sm:$0xf0]  ;;  %v4712_v53 = vld [vmem:[#allocation4 + $0x788] sm:$0xf] }
 0x12b   : > { %v4521_v2 = vor.u32 %v5347_v52, %v4520_v50 }
 0x12c   : > { %2595 = vmatpush.bf16.msra.mxu0 %v4329_v0  ;;  %2586 = vmatpush.bf16.msrb.mxu3 %v4137_v16  ;;  %v5205_v0 = vld [vmem:[#allocation4 + $0x1ac] sm:$0xf] }
 0x12d   : > { %v3965_v12 = vor.u32 %v5205_v0, %v3962_v1  ;;  %v5201_v16 = vld [vmem:[#allocation4 + $0x18c] sm:$0xf]  ;;  %v4250_v1 = vld [vmem:[#allocation4 + $0x3f8] sm:$0xf0] }
 0x12e   : > { %2621 = vmatpush.bf16.msrb.mxu2 %v4585_v5  ;;  %2610 = vmatpush.bf16.msrb.mxu1 %v4425_v7  ;;  %v4713_v5 = vor.u32 %v5395_v54, %v4712_v53  ;;  %v3869_v7 = vor.u32 %v5181_v55, %v3866_v57  ;;  %v5379_v55 = vld [vmem:[#allocation4 + $0x714] sm:$0xf0]  ;;  %v3802_v57 = vld [vmem:[#allocation4 + $0x78] sm:$0xf0]  ;;  %v5277_v0 = vld [vmem:[#allocation4 + $0x3ec] sm:$0xf] }
 0x12f   : > { %2587 = vmatmul.bf16.vlgmr.msrb.gmra.mxu3 %v5879_v62  ;;  %v4253_v13 = vor.u32 %v5277_v0, %v4250_v1 }
 0x130   : > { %2596 = vmatpush.bf16.msra.mxu0 %v4313_v17  ;;  %2631 = vmatpush.bf16.msra.mxu3 %v4761_v19  ;;  %v3946_v17 = vld [vmem:[#allocation4 + $0x198] sm:$0xf0]  ;;  %v5906_v19 = vld [vmem:[%s6025_s4] sm:$0xf] }
 0x131   : > { %v3949_v26 = vor.u32 %v5201_v16, %v3946_v17  ;;  %v1044_v30 = vperm.slane %v5906_v19, 0  ;;  %v5225_v16 = vld [vmem:[#allocation4 + $0x24c] sm:$0xf]  ;;  %v4042_v17 = vld [vmem:[#allocation4 + $0x258] sm:$0xf0] }
 0x132   : > { %2622 = vmatpush.bf16.msrb.mxu2 %v4569_v18  ;;  %2611 = vmatpush.bf16.msrb.mxu1 %v4409_v23  ;;  %v4697_v18 = vor.u32 %v5391_v10, %v4696_v9  ;;  %v4680_v23 = vld [vmem:[#allocation4 + $0x748] sm:$0xf]  ;;  %v4045_v27 = vor.u32 %v5225_v16, %v4042_v17  ;;  %v4618_v16 = vld [vmem:[#allocation4 + $0x6d8] sm:$0xf0]  ;;  %v5329_v17 = vld [vmem:[#allocation4 + $0x58c] sm:$0xf] }
 0x134   : > { %2597 = vmatpush.bf16.msra.mxu0 %v4297_v29  ;;  %2632 = vmatpush.bf16.msra.mxu3 %v4745_v34  ;;  %v4090_v29 = vld [vmem:[#allocation4 + $0x2b8] sm:$0xf0]  ;;  %v4681_v34 = vor.u32 %v5387_v24, %v4680_v23  ;;  %v5341_v23 = vld [vmem:[#allocation4 + $0x5ec] sm:$0xf] }
 0x135   : > { %v4093_v36 = vor.u32 %v5237_v28, %v4090_v29  ;;  %v4506_v24 = vld [vmem:[#allocation4 + $0x5f8] sm:$0xf0]  ;;  %v5157_v28 = vld [vmem:[#allocation4 + $0x2c] sm:$0xf] }
 0x136   : > { %2623 = vmatpush.bf16.msrb.mxu2 %v4553_v33  ;;  %2612 = vmatpush.bf16.msrb.mxu1 %v4393_v39  ;;  %v2354_v20 = vpop.f32.mrf.mxu1  ;;  %v3930_v33 = vld [vmem:[#allocation4 + $0x178] sm:$0xf0]  ;;  %v5383_v39 = vld [vmem:[#allocation4 + $0x734] sm:$0xf0] }
 0x137   : > { %v3933_v42 = vor.u32 %v5197_v31, %v3930_v33  ;;  %v3770_v31 = vld [vmem:[#allocation4 + $0x38] sm:$0xf0]  ;;  %v5221_v33 = vld [vmem:[#allocation4 + $0x22c] sm:$0xf] }
 0x138   : > { %2598 = vmatpush.bf16.msra.mxu0 %v4281_v44  ;;  %2633 = vmatpush.bf16.msra.mxu3 %v4729_v49  ;;  %v5233_v44 = vld [vmem:[#allocation4 + $0x28c] sm:$0xf]  ;;  %v4665_v49 = vor.u32 %v5383_v39, %v4664_v37  ;;  %v4218_v37 = vld [vmem:[#allocation4 + $0x3b8] sm:$0xf0] }
 0x139   : > { %2613 = vmatmul.bf16.vlgmr.msrb.gmra.mxu1 %v5874_v38  ;;  %v4077_v53 = vor.u32 %v5233_v44, %v4074_v46  ;;  %v5337_v39 = vld [vmem:[#allocation4 + $0x5cc] sm:$0xf]  ;;  %v3754_v46 = vld [vmem:[#allocation4 + $0x18] sm:$0xf0] }
 0x13a   : > { %2657 = vmatpush.bf16.msra.mxu1 %v3997_v43  ;;  %2624 = vmatpush.bf16.msrb.mxu2 %v4537_v48  ;;  %v3818_v43 = vld [vmem:[#allocation4 + $0x98] sm:$0xf0]  ;;  %v5153_v44 = vld [vmem:[#allocation4 + $0xc] sm:$0xf] }
 0x13b   : > { %v2341_v41 = vpop.f32.mrf.mxu0  ;;  %v3914_v48 = vld [vmem:[#allocation4 + $0x158] sm:$0xf0]  ;;  %v3821_v52 = vor.u32 %v5169_v40, %v3818_v43  ;;  %v3757_v0 = vor.u32 %v5153_v44, %v3754_v46 }
 0x13c   : > { %2599 = vmatpush.bf16.msra.mxu0 %v4265_v61  ;;  %2634 = vmatpush.bf16.msra.mxu3 %v4713_v5  ;;  %v2342_v32 = vadd.f32 %v2341_v41, %v1044_v30  ;;  %v3917_v59 = vor.u32 %v5193_v47, %v3914_v48  ;;  %v4058_v61 = vld [vmem:[#allocation4 + $0x278] sm:$0xf0] }
 0x13d   : > { %v3898_v5 = vld [vmem:[#allocation4 + $0x138] sm:$0xf0]  ;;  %v4061_v10 = vor.u32 %v5229_v60, %v4058_v61 }
 0x13e   : > { %2658 = vmatpush.bf16.msra.mxu1 %v3981_v56  ;;  %2625 = vmatpush.bf16.msrb.mxu2 %v4521_v2  ;;  %v2356_v50 = vpop.f32.mrf.mxu1  ;;  %v5911_v54 = vadd.f32 %v2354_v20, %v2342_v32  ;;  %v5165_v56 = vld [vmem:[#allocation4 + $0x6c] sm:$0xf]  ;;  %v4234_v20 = vld [vmem:[#allocation4 + $0x3d8] sm:$0xf0] }
 0x13f   : > { %2600 = vmatmul.bf16.vlgmr.msra.gmra.mxu0 %v5877_v58  ;;  %v5189_v2 = vld [vmem:[#allocation4 + $0x12c] sm:$0xf]  ;;  %v3805_v9 = vor.u32 %v5165_v56, %v3802_v57  ;;  %v4490_v40 = vld [vmem:[#allocation4 + $0x5d8] sm:$0xf0] }
 0x140   : > { %2644 = vmatpush.bf16.msrb.mxu0 %v3869_v7  ;;  %2635 = vmatpush.bf16.msra.mxu3 %v4697_v18  ;;  %v4649_v7 = vor.u32 %v5379_v55, %v4648_v51  ;;  %v3901_v15 = vor.u32 %v5189_v2, %v3898_v5  ;;  %v5273_v18 = vld [vmem:[#allocation4 + $0x3cc] sm:$0xf]  ;;  %v4010_v48 = vld [vmem:[#allocation4 + $0x218] sm:$0xf0] }
 0x141   : > { %2626 = vmatmul.bf16.vlgmr.msrb.gmra.mxu2 %v5881_v4  ;;  %v4237_v29 = vor.u32 %v5273_v18, %v4234_v20  ;;  %v5217_v32 = vld [vmem:[#allocation4 + $0x20c] sm:$0xf]  ;;  %v4202_v51 = vld [vmem:[#allocation4 + $0x398] sm:$0xf0] }
 0x142   : > { %2670 = vmatpush.bf16.msra.mxu2 %v4125_v8  ;;  %2659 = vmatpush.bf16.msra.mxu1 %v3965_v12  ;;  %v3786_v12 = vld [vmem:[#allocation4 + $0x58] sm:$0xf0]  ;;  %v5373_v56 = vld [vmem:[#allocation4 + $0x6ec] sm:$0xf]  ;;  %v4013_v1 = vor.u32 %v5217_v32, %v4010_v48 }
 0x143   : > { %v2343_v14 = vpop.f32.mrf.mxu0  ;;  %v4378_v55 = vld [vmem:[#allocation4 + $0x4f8] sm:$0xf0]  ;;  %v5321_v32 = vld [vmem:[#allocation4 + $0x54c] sm:$0xf] }
 0x144   : > { %2645 = vmatpush.bf16.msrb.mxu0 %v3853_v21  ;;  %2636 = vmatpush.bf16.msra.mxu3 %v4681_v34  ;;  %v5913_v8 = vpop.f32.mrf.mxu2  ;;  %v5185_v21 = vld [vmem:[#allocation4 + $0x10c] sm:$0xf]  ;;  %v4026_v34 = vld [vmem:[#allocation4 + $0x238] sm:$0xf0] }
 0x145   : > { %v4029_v43 = vor.u32 %v5221_v33, %v4026_v34  ;;  %v4634_v57 = vld [vmem:[#allocation4 + $0x6f8] sm:$0xf0]  ;;  %v5369_v14 = vld [vmem:[#allocation4 + $0x6cc] sm:$0xf] }
 0x146   : > { %2671 = vmatpush.bf16.msra.mxu2 %v4109_v22  ;;  %2660 = vmatpush.bf16.msra.mxu1 %v3949_v26  ;;  %v3882_v22 = vld [vmem:[#allocation4 + $0x118] sm:$0xf0]  ;;  %v5915_v25 = vpop.f32.mrf.mxu1  ;;  %v3789_v26 = vor.u32 %v5161_v11, %v3786_v12  ;;  %v5305_v12 = vld [vmem:[#allocation4 + $0x4cc] sm:$0xf] }
 0x147   : > { %v3885_v30 = vor.u32 %v5185_v21, %v3882_v22  ;;  %v4474_v60 = vld [vmem:[#allocation4 + $0x5b8] sm:$0xf0]  ;;  %v5257_v22 = vld [vmem:[#allocation4 + $0x34c] sm:$0xf] }
 0x148   : > { %2646 = vmatpush.bf16.msrb.mxu0 %v3837_v35  ;;  %2637 = vmatpush.bf16.msra.mxu3 %v4665_v49  ;;  %v4509_v35 = vor.u32 %v5341_v23, %v4506_v24  ;;  %v5265_v49 = vld [vmem:[#allocation4 + $0x38c] sm:$0xf]  ;;  %v4458_v18 = vld [vmem:[#allocation4 + $0x598] sm:$0xf0] }
 0x149   : > { %v4205_v2 = vor.u32 %v5265_v49, %v4202_v51  ;;  %v4170_v23 = vld [vmem:[#allocation4 + $0x358] sm:$0xf0]  ;;  %v5325_v33 = vld [vmem:[#allocation4 + $0x56c] sm:$0xf] }
 0x14a   : > { %2672 = vmatpush.bf16.msra.mxu2 %v4093_v36  ;;  %2661 = vmatpush.bf16.msra.mxu1 %v3933_v42  ;;  %v5269_v36 = vld [vmem:[#allocation4 + $0x3ac] sm:$0xf]  ;;  %v3773_v42 = vor.u32 %v5157_v28, %v3770_v31  ;;  %v4602_v31 = vld [vmem:[#allocation4 + $0x6b8] sm:$0xf0] }
 0x14b   : > { %v4221_v47 = vor.u32 %v5269_v36, %v4218_v37  ;;  %v5301_v28 = vld [vmem:[#allocation4 + $0x4ac] sm:$0xf]  ;;  %v4442_v34 = vld [vmem:[#allocation4 + $0x578] sm:$0xf0]  ;;  %v4173_v36 = vor.u32 %v5257_v22, %v4170_v23 }
 0x14c   : > { %2647 = vmatpush.bf16.msrb.mxu0 %v3821_v52  ;;  %2638 = vmatpush.bf16.msra.mxu3 %v4649_v7  ;;  %v2369_v41 = vpop.f32.mrf.mxu2  ;;  %v5918_v50 = vpop.f32.mrf.mxu0  ;;  %v4493_v52 = vor.u32 %v5337_v39, %v4490_v40  ;;  %v5261_v7 = vld [vmem:[#allocation4 + $0x36c] sm:$0xf]  ;;  %v4154_v40 = vld [vmem:[#allocation4 + $0x338] sm:$0xf0] }
 0x14d   : > { %v5253_v39 = vld [vmem:[#allocation4 + $0x32c] sm:$0xf]  ;;  %v4330_v44 = vld [vmem:[#allocation4 + $0x498] sm:$0xf0] }
 0x14e   : > { %2673 = vmatpush.bf16.msra.mxu2 %v4077_v53  ;;  %2662 = vmatpush.bf16.msra.mxu1 %v3917_v59  ;;  %v5309_v53 = vld [vmem:[#allocation4 + $0x4ec] sm:$0xf]  ;;  %v2408_v61 = vpop.f32.mrf.mxu1  ;;  %v4157_v49 = vor.u32 %v5253_v39, %v4154_v40  ;;  %v4746_v23 = vld [vmem:[#allocation4 + $0x7d8] sm:$0xf0] }
 0x14f   : > { %2639 = vmatmul.bf16.vlgmr.msra.gmra.mxu3 %v5888_v6  ;;  %v5333_v59 = vld [vmem:[#allocation4 + $0x5ac] sm:$0xf]  ;;  %v4381_v5 = vor.u32 %v5309_v53, %v4378_v55  ;;  %v4138_v53 = vld [vmem:[#allocation4 + $0x318] sm:$0xf0] }
 0x150   : > { %2648 = vmatpush.bf16.msrb.mxu0 %v3805_v9  ;;  %2683 = vmatpush.bf16.msrb.mxu3 %v4253_v13  ;;  %v4186_v9 = vld [vmem:[#allocation4 + $0x378] sm:$0xf0]  ;;  %v4477_v11 = vor.u32 %v5333_v59, %v4474_v60  ;;  %v5293_v59 = vld [vmem:[#allocation4 + $0x46c] sm:$0xf] }
 0x151   : > { %v4362_v13 = vld [vmem:[#allocation4 + $0x4d8] sm:$0xf0]  ;;  %v5357_v61 = vld [vmem:[#allocation4 + $0x66c] sm:$0xf] }
 0x152   : > { %2674 = vmatpush.bf16.msra.mxu2 %v4061_v10  ;;  %2663 = vmatpush.bf16.msra.mxu1 %v3901_v15  ;;  %v4637_v10 = vor.u32 %v5373_v56, %v4634_v57  ;;  %v5921_v15 = vpop.f32.mrf.mxu3  ;;  %v4365_v21 = vor.u32 %v5305_v12, %v4362_v13  ;;  %v4314_v60 = vld [vmem:[#allocation4 + $0x478] sm:$0xf0]  ;;  %v5401_v22 = vld [vmem:[#allocation4 + $0x7cc] sm:$0xf] }
 0x153   : > { %v5349_v39 = vld [vmem:[#allocation4 + $0x62c] sm:$0xf] }
 0x154   : > { %2649 = vmatpush.bf16.msrb.mxu0 %v3789_v26  ;;  %2684 = vmatpush.bf16.msrb.mxu3 %v4237_v29  ;;  %v5923_v20 = vpop.f32.mrf.mxu2  ;;  %v2395_v24 = vpop.f32.mrf.mxu0  ;;  %v4621_v26 = vor.u32 %v5369_v14, %v4618_v16  ;;  %v4346_v29 = vld [vmem:[#allocation4 + $0x4b8] sm:$0xf0]  ;;  %v5289_v14 = vld [vmem:[#allocation4 + $0x44c] sm:$0xf] }
 0x155   : > { %v4349_v37 = vor.u32 %v5301_v28, %v4346_v29  ;;  %v4298_v16 = vld [vmem:[#allocation4 + $0x458] sm:$0xf0]  ;;  %v5313_v24 = vld [vmem:[#allocation4 + $0x50c] sm:$0xf]  ;;  %v4888_v29 = vld [vmem:[#allocation6 + $0xf0] sm:$0xf] }
 0x156   : > { %2675 = vmatpush.bf16.msra.mxu2 %v4045_v27  ;;  %2664 = vmatpush.bf16.msra.mxu1 %v3885_v30  ;;  %v4461_v27 = vor.u32 %v5329_v17, %v4458_v18  ;;  %v5365_v30 = vld [vmem:[#allocation4 + $0x6ac] sm:$0xf]  ;;  %v4301_v28 = vor.u32 %v5289_v14, %v4298_v16  ;;  %v4864_v16 = vld [vmem:[#allocation6 + $0xc0] sm:$0xf] }
 0x157   : > { %v4605_v41 = vor.u32 %v5365_v30, %v4602_v31  ;;  %v5353_v17 = vld [vmem:[#allocation4 + $0x64c] sm:$0xf]  ;;  %v5439_v30 = vld [vmem:[#allocation6 + $0xf4] sm:$0xf0] }
 0x158   : > { %2650 = vmatpush.bf16.msrb.mxu0 %v3773_v42  ;;  %2685 = vmatpush.bf16.msrb.mxu3 %v4221_v47  ;;  %v4445_v42 = vor.u32 %v5325_v33, %v4442_v34  ;;  %v4426_v47 = vld [vmem:[#allocation4 + $0x558] sm:$0xf0]  ;;  %v4749_v34 = vor.u32 %v5401_v22, %v4746_v23  ;;  %v5385_v22 = vld [vmem:[#allocation4 + $0x74c] sm:$0xf] }
 0x159   : > { %2665 = vmatmul.bf16.vlgmr.msra.gmra.mxu1 %v5861_v45  ;;  %v4189_v45 = vor.u32 %v5261_v7, %v4186_v9  ;;  %v4429_v57 = vor.u32 %v5321_v32, %v4426_v47  ;;  %v5317_v7 = vld [vmem:[#allocation4 + $0x52c] sm:$0xf]  ;;  %v4410_v9 = vld [vmem:[#allocation4 + $0x538] sm:$0xf0] }
 0x15a   : > { %2709 = vmatpush.bf16.msrb.mxu1 %v4509_v35  ;;  %2676 = vmatpush.bf16.msra.mxu2 %v4029_v43  ;;  %v5927_v35 = vpop.f32.mrf.mxu1  ;;  %v5297_v43 = vld [vmem:[#allocation4 + $0x48c] sm:$0xf]  ;;  %v2382_v46 = vpop.f32.mrf.mxu3  ;;  %v4682_v23 = vld [vmem:[#allocation4 + $0x758] sm:$0xf0] }
 0x15b   : > { %v4333_v51 = vor.u32 %v5297_v43, %v4330_v44  ;;  %v4730_v43 = vld [vmem:[#allocation4 + $0x7b8] sm:$0xf0]  ;;  %v4889_v44 = vor.u32 %v5439_v30, %v4888_v29  ;;  %v4880_v46 = vld [vmem:[#allocation6 + $0xe0] sm:$0xf]  ;;  %v4856_v29 = vld [vmem:[#allocation6 + $0xb0] sm:$0xf] }
 0x15c   : > { %2651 = vmatpush.bf16.msrb.mxu0 %v3757_v0  ;;  %2686 = vmatpush.bf16.msrb.mxu3 %v4205_v2  ;;  %v2421_v48 = vpop.f32.mrf.mxu2  ;;  %v5929_v55 = vpop.f32.mrf.mxu0  ;;  %v4570_v0 = vld [vmem:[#allocation4 + $0x678] sm:$0xf0]  ;;  %v5431_v30 = vld [vmem:[#allocation6 + $0xb4] sm:$0xf0] }
 0x15d   : > { %v4762_v2 = vld [vmem:[#allocation4 + $0x7f8] sm:$0xf0]  ;;  %v4573_v12 = vor.u32 %v5357_v61, %v4570_v0  ;;  %v5281_v48 = vld [vmem:[#allocation4 + $0x40c] sm:$0xf] }
 0x15e   : > { %2710 = vmatpush.bf16.msrb.mxu1 %v4493_v52  ;;  %2677 = vmatpush.bf16.msra.mxu2 %v4013_v1  ;;  %v5249_v52 = vld [vmem:[#allocation4 + $0x30c] sm:$0xf] }
 0x15f   : > { %2652 = vmatmul.bf16.vlgmr.msrb.gmra.mxu0 %v5864_v63  ;;  %v5361_v63 = vld [vmem:[#allocation4 + $0x68c] sm:$0xf] }
 0x160   : > { %2696 = vmatpush.bf16.msra.mxu0 %v4381_v5  ;;  %2687 = vmatpush.bf16.msrb.mxu3 %v4189_v45  ;;  %v5405_v1 = vld [vmem:[#allocation4 + $0x7ec] sm:$0xf]  ;;  %v4413_v45 = vor.u32 %v5317_v7, %v4410_v9 }
 0x161   : > { %2678 = vmatmul.bf16.vlgmr.msra.gmra.mxu2 %v5866_v3  ;;  %v4586_v3 = vld [vmem:[#allocation4 + $0x698] sm:$0xf0]  ;;  %v4765_v13 = vor.u32 %v5405_v1, %v4762_v2  ;;  %v4872_v1 = vld [vmem:[#allocation6 + $0xd0] sm:$0xf]  ;;  %v5435_v2 = vld [vmem:[#allocation6 + $0xd4] sm:$0xf0] }
 0x162   : > { %2722 = vmatpush.bf16.msrb.mxu2 %v4637_v10  ;;  %2711 = vmatpush.bf16.msrb.mxu1 %v4477_v11  ;;  %v4589_v56 = vor.u32 %v5361_v63, %v4586_v3  ;;  %v2460_v5 = vpop.f32.mrf.mxu1  ;;  %v4141_v10 = vor.u32 %v5249_v52, %v4138_v53  ;;  %v4317_v11 = vor.u32 %v5293_v59, %v4314_v60  ;;  %v5931_v18 = vpop.f32.mrf.mxu3  ;;  %v5437_v3 = vld [vmem:[#allocation6 + $0xe4] sm:$0xf0]  ;;  %v4522_v53 = vld [vmem:[#allocation4 + $0x618] sm:$0xf0]  ;;  %v4824_v59 = vld [vmem:[#allocation6 + $0x70] sm:$0xf] }
 0x163   : > { %v4881_v60 = vor.u32 %v5437_v3, %v4880_v46  ;;  %v4873_v14 = vor.u32 %v5435_v2, %v4872_v1  ;;  %v5377_v3 = vld [vmem:[#allocation4 + $0x70c] sm:$0xf]  ;;  %v5425_v1 = vld [vmem:[#allocation6 + $0x84] sm:$0xf0] }
 0x164   : > { %2697 = vmatpush.bf16.msra.mxu0 %v4365_v21  ;;  %2688 = vmatpush.bf16.msrb.mxu3 %v4173_v36  ;;  %v4554_v21 = vld [vmem:[#allocation4 + $0x658] sm:$0xf0]  ;;  %v2447_v31 = vpop.f32.mrf.mxu0  ;;  %v5285_v36 = vld [vmem:[#allocation4 + $0x42c] sm:$0xf] }
 0x165   : > { %v4557_v33 = vor.u32 %v5353_v17, %v4554_v21  ;;  %v5433_v17 = vld [vmem:[#allocation6 + $0xc4] sm:$0xf0] }
 0x166   : > { %2723 = vmatpush.bf16.msrb.mxu2 %v4621_v26  ;;  %2712 = vmatpush.bf16.msrb.mxu1 %v4461_v27  ;;  %v4394_v26 = vld [vmem:[#allocation4 + $0x518] sm:$0xf0]  ;;  %v5933_v27 = vpop.f32.mrf.mxu2 }
 0x167   : > { %v4397_v40 = vor.u32 %v5313_v24, %v4394_v26  ;;  %v5419_v24 = vld [vmem:[#allocation6 + $0x54] sm:$0xf0]  ;;  %v4865_v26 = vor.u32 %v5433_v17, %v4864_v16  ;;  %v5436_v16 = vld [vmem:[#allocation6 + $0xe4] sm:$0xf] }
 0x168   : > { %2698 = vmatpush.bf16.msra.mxu0 %v4349_v37  ;;  %2689 = vmatpush.bf16.msrb.mxu3 %v4157_v49  ;;  %v4282_v37 = vld [vmem:[#allocation4 + $0x438] sm:$0xf0] }
 0x169   : > { %v4285_v63 = vor.u32 %v5285_v36, %v4282_v37  ;;  %v4266_v49 = vld [vmem:[#allocation4 + $0x418] sm:$0xf0]  ;;  %v5381_v36 = vld [vmem:[#allocation4 + $0x72c] sm:$0xf] }
 0x16a   : > { %2724 = vmatpush.bf16.msrb.mxu2 %v4605_v41  ;;  %2713 = vmatpush.bf16.msrb.mxu1 %v4445_v42  ;;  %v4538_v41 = vld [vmem:[#allocation4 + $0x638] sm:$0xf0]  ;;  %v5397_v42 = vld [vmem:[#allocation4 + $0x7ac] sm:$0xf]  ;;  %v2434_v52 = vpop.f32.mrf.mxu3  ;;  %v4269_v0 = vor.u32 %v5281_v48, %v4266_v49  ;;  %v5415_v48 = vld [vmem:[#allocation6 + $0x34] sm:$0xf0] }
 0x16b   : > { %v4541_v32 = vor.u32 %v5349_v39, %v4538_v41  ;;  %v4733_v47 = vor.u32 %v5397_v42, %v4730_v43  ;;  %v4666_v37 = vld [vmem:[#allocation4 + $0x738] sm:$0xf0]  ;;  %v4800_v39 = vld [vmem:[#allocation6 + $0x40] sm:$0xf]  ;;  %v4857_v41 = vor.u32 %v5431_v30, %v4856_v29  ;;  %v5429_v42 = vld [vmem:[#allocation6 + $0xa4] sm:$0xf0] }
 0x16c   : > { %2699 = vmatpush.bf16.msra.mxu0 %v4333_v51  ;;  %2690 = vmatpush.bf16.msrb.mxu3 %v4141_v10  ;;  %v5345_v51 = vld [vmem:[#allocation4 + $0x60c] sm:$0xf]  ;;  %v5427_v52 = vld [vmem:[#allocation6 + $0x94] sm:$0xf0]  ;;  %v5409_v29 = vld [vmem:[#allocation6 + $0x4] sm:$0xf0] }
 0x16d   : > { %v4525_v5 = vor.u32 %v5345_v51, %v4522_v53  ;;  %v5389_v10 = vld [vmem:[#allocation4 + $0x76c] sm:$0xf]  ;;  %v4840_v51 = vld [vmem:[#allocation6 + $0x90] sm:$0xf]  ;;  %v4826_v30 = vld [vmem:[#allocation6 + $0x78] sm:$0xf0] }
 0x16e   : > { %2725 = vmatpush.bf16.msrb.mxu2 %v4589_v56  ;;  %2714 = vmatpush.bf16.msrb.mxu1 %v4429_v57  ;;  %v5393_v56 = vld [vmem:[#allocation4 + $0x78c] sm:$0xf]  ;;  %v4714_v57 = vld [vmem:[#allocation4 + $0x798] sm:$0xf0]  ;;  %v2473_v61 = vpop.f32.mrf.mxu2 }
 0x16f   : > { %2691 = vmatmul.bf16.vlgmr.msrb.gmra.mxu3 %v5879_v62  ;;  %v5423_v62 = vld [vmem:[#allocation6 + $0x74] sm:$0xf0]  ;;  %v4717_v7 = vor.u32 %v5393_v56, %v4714_v57 }
 0x170   : > { %2700 = vmatpush.bf16.msra.mxu0 %v4317_v11  ;;  %2735 = vmatpush.bf16.msra.mxu3 %v4765_v13  ;;  %v4825_v9 = vor.u32 %v5423_v62, %v4824_v59  ;;  %v4698_v11 = vld [vmem:[#allocation4 + $0x778] sm:$0xf0]  ;;  %v5421_v13 = vld [vmem:[#allocation6 + $0x64] sm:$0xf0]  ;;  %v4784_v59 = vld [vmem:[#allocation6 + $0x20] sm:$0xf] }
 0x171   : > { %v5413_v62 = vld [vmem:[#allocation6 + $0x24] sm:$0xf0] }
 0x172   : > { %2726 = vmatpush.bf16.msrb.mxu2 %v4573_v12  ;;  %2715 = vmatpush.bf16.msrb.mxu1 %v4413_v45  ;;  %v4816_v12 = vld [vmem:[#allocation6 + $0x60] sm:$0xf]  ;;  %v4701_v45 = vor.u32 %v5389_v10, %v4698_v11  ;;  %v4785_v10 = vor.u32 %v5413_v62, %v4784_v59  ;;  %v4776_v11 = vld [vmem:[#allocation6 + $0x10] sm:$0xf]  ;;  %v5430_v59 = vld [vmem:[#allocation6 + $0xb4] sm:$0xf] }
 0x173   : > { %v4817_v21 = vor.u32 %v5421_v13, %v4816_v12  ;;  %v5411_v12 = vld [vmem:[#allocation6 + $0x14] sm:$0xf0]  ;;  %v4858_v62 = vld [vmem:[#allocation6 + $0xb8] sm:$0xf0] }
 0x174   : > { %2701 = vmatpush.bf16.msra.mxu0 %v4301_v28  ;;  %2736 = vmatpush.bf16.msra.mxu3 %v4749_v34  ;;  %v5939_v28 = vpop.f32.mrf.mxu3 }
 0x176   : > { %2727 = vmatpush.bf16.msrb.mxu2 %v4557_v33  ;;  %2716 = vmatpush.bf16.msrb.mxu1 %v4397_v40  ;;  %v5941_v31 = vpop.f32.mrf.mxu1  ;;  %v4685_v33 = vor.u32 %v5385_v22, %v4682_v23  ;;  %v5417_v40 = vld [vmem:[#allocation6 + $0x44] sm:$0xf0]  ;;  %v4777_v23 = vor.u32 %v5411_v12, %v4776_v11 }
 0x177   : > { %v4801_v46 = vor.u32 %v5417_v40, %v4800_v39 }
 0x178   : > { %2702 = vmatpush.bf16.msra.mxu0 %v4285_v63  ;;  %2737 = vmatpush.bf16.msra.mxu3 %v4733_v47  ;;  %v4792_v47 = vld [vmem:[#allocation6 + $0x30] sm:$0xf] }
 0x179   : > { %2717 = vmatmul.bf16.vlgmr.msrb.gmra.mxu1 %v5874_v38  ;;  %v4808_v38 = vld [vmem:[#allocation6 + $0x50] sm:$0xf]  ;;  %v4793_v57 = vor.u32 %v5415_v48, %v4792_v47 }
 0x17a   : > { %3159 = vmatpush.bf16.msra.mxu1 %v4889_v44  ;;  %2728 = vmatpush.bf16.msrb.mxu2 %v4541_v32  ;;  %v4809_v34 = vor.u32 %v5419_v24, %v4808_v38  ;;  %v4669_v44 = vor.u32 %v5381_v36, %v4666_v37  ;;  %v4650_v32 = vld [vmem:[#allocation4 + $0x718] sm:$0xf0]  ;;  %v4944_v37 = vld [vmem:[#allocation6 + $0x160] sm:$0xf] }
 0x17b   : > { %v4653_v56 = vor.u32 %v5377_v3, %v4650_v32  ;;  %v4874_v36 = vld [vmem:[#allocation6 + $0xd8] sm:$0xf0]  ;;  %v5451_v3 = vld [vmem:[#allocation6 + $0x154] sm:$0xf0] }
 0x17c   : > { %2703 = vmatpush.bf16.msra.mxu0 %v4269_v0  ;;  %2738 = vmatpush.bf16.msra.mxu3 %v4717_v7  ;;  %v5946_v63 = vpop.f32.mrf.mxu0  ;;  %v2486_v49 = vpop.f32.mrf.mxu3  ;;  %v4832_v0 = vld [vmem:[#allocation6 + $0x80] sm:$0xf]  ;;  %v5438_v7 = vld [vmem:[#allocation6 + $0xf4] sm:$0xf] }
 0x17d   : > { %v4833_v13 = vor.u32 %v5425_v1, %v4832_v0  ;;  %v4810_v49 = vld [vmem:[#allocation6 + $0x58] sm:$0xf0]  ;;  %v5416_v0 = vld [vmem:[#allocation6 + $0x44] sm:$0xf]  ;;  %v4802_v1 = vld [vmem:[#allocation6 + $0x48] sm:$0xf0] }
 0x17e   : > { %3160 = vmatpush.bf16.msra.mxu1 %v4881_v60  ;;  %2729 = vmatpush.bf16.msrb.mxu2 %v4525_v5  ;;  %v4841_v60 = vor.u32 %v5427_v52, %v4840_v51  ;;  %v4928_v52 = vld [vmem:[#allocation6 + $0x140] sm:$0xf]  ;;  %v4805_v12 = vor.u32 %v5416_v0, %v4802_v1  ;;  %v5444_v1 = vld [vmem:[#allocation6 + $0x124] sm:$0xf] }
 0x17f   : > { %2704 = vmatmul.bf16.vlgmr.msra.gmra.mxu0 %v5877_v58  ;;  %v2368_v58 = vadd.f32 %v5913_v8, %v5911_v54  ;;  %v1045_v8 = vperm.slane %v5906_v19, 1 }
 0x180   : > { %3146 = vmatpush.bf16.msrb.mxu0 %v4825_v9  ;;  %2739 = vmatpush.bf16.msra.mxu3 %v4701_v45  ;;  %v4890_v9 = vld [vmem:[#allocation6 + $0xf8] sm:$0xf0]  ;;  %v4952_v45 = vld [vmem:[#allocation6 + $0x170] sm:$0xf] }
 0x181   : > { %2730 = vmatmul.bf16.vlgmr.msrb.gmra.mxu2 %v5881_v4  ;;  %v4848_v4 = vld [vmem:[#allocation6 + $0xa0] sm:$0xf]  ;;  %v2381_v43 = vadd.f32 %v5921_v15, %v2368_v58  ;;  %v2512_v15 = vpop.f32.mrf.mxu1  ;;  %v2446_v61 = vadd.f32 %v5929_v55, %v1045_v8  ;;  %v4893_v55 = vor.u32 %v5438_v7, %v4890_v9  ;;  %v5447_v7 = vld [vmem:[#allocation6 + $0x134] sm:$0xf0] }
 0x182   : > { %3161 = vmatpush.bf16.msra.mxu1 %v4873_v14  ;;  %v4849_v54 = vor.u32 %v5429_v42, %v4848_v4  ;;  %v5420_v4 = vld [vmem:[#allocation6 + $0x64] sm:$0xf] }
 0x183   : > { %v2394_v53 = vadd.f32 %v5918_v50, %v2381_v43  ;;  %v2459_v14 = vadd.f32 %v5927_v35, %v2446_v61  ;;  %v5432_v43 = vld [vmem:[#allocation6 + $0xc4] sm:$0xf] }
 0x184   : > { %3147 = vmatpush.bf16.msrb.mxu0 %v4817_v21  ;;  %2740 = vmatpush.bf16.msra.mxu3 %v4685_v33  ;;  %v2523_v5 = vpop.f32.mrf.mxu2  ;;  %v2499_v50 = vpop.f32.mrf.mxu0  ;;  %v5455_v21 = vld [vmem:[#allocation6 + $0x174] sm:$0xf0] }
 0x185   : > { %v2407_v2 = vadd.f32 %v5915_v25, %v2394_v53  ;;  %v4882_v25 = vld [vmem:[#allocation6 + $0xe8] sm:$0xf0]  ;;  %v2472_v22 = vadd.f32 %v5933_v27, %v2459_v14  ;;  %v4953_v38 = vor.u32 %v5455_v21, %v4952_v45  ;;  %v5453_v27 = vld [vmem:[#allocation6 + $0x164] sm:$0xf0]  ;;  %v5428_v50 = vld [vmem:[#allocation6 + $0xa4] sm:$0xf] }
 0x186   : > { %3162 = vmatpush.bf16.msra.mxu1 %v4865_v26  ;;  %v4768_v26 = vld [vmem:[#allocation6] sm:$0xf]  ;;  %v4885_v33 = vor.u32 %v5436_v16, %v4882_v25  ;;  %v5449_v53 = vld [vmem:[#allocation6 + $0x144] sm:$0xf0] }
 0x187   : > { %v2420_v17 = vadd.f32 %v5923_v20, %v2407_v2  ;;  %v2485_v35 = vadd.f32 %v5939_v28, %v2472_v22  ;;  %v5434_v20 = vld [vmem:[#allocation6 + $0xd4] sm:$0xf]  ;;  %3172 = vmatpush.bf16.msra.mxu2 %v4953_v38  ;;  %v4769_v39 = vor.u32 %v5409_v29, %v4768_v26  ;;  %v4818_v28 = vld [vmem:[#allocation6 + $0x68] sm:$0xf0]  ;;  %v4861_v2 = vor.u32 %v5430_v59, %v4858_v62  ;;  %v4912_v16 = vld [vmem:[#allocation6 + $0x120] sm:$0xf] }
 0x188   : > { %3148 = vmatpush.bf16.msrb.mxu0 %v4809_v34  ;;  %2741 = vmatpush.bf16.msra.mxu3 %v4669_v44  ;;  %v4877_v42 = vor.u32 %v5434_v20, %v4874_v36  ;;  %v4866_v44 = vld [vmem:[#allocation6 + $0xc8] sm:$0xf0]  ;;  %v4842_v38 = vld [vmem:[#allocation6 + $0x98] sm:$0xf0]  ;;  %v5412_v26 = vld [vmem:[#allocation6 + $0x24] sm:$0xf] }
 0x189   : > { %v2433_v24 = vadd.f32 %v5931_v18, %v2420_v17  ;;  %v2498_v58 = vadd.f32 %v5946_v63, %v2485_v35  ;;  %v4945_v18 = vor.u32 %v5453_v27, %v4944_v37  ;;  %v4821_v63 = vor.u32 %v5420_v4, %v4818_v28  ;;  %v5445_v17 = vld [vmem:[#allocation6 + $0x124] sm:$0xf0]  ;;  %v4786_v29 = vld [vmem:[#allocation6 + $0x28] sm:$0xf0]  ;;  %v5454_v28 = vld [vmem:[#allocation6 + $0x174] sm:$0xf] }
 0x18a   : > { %3163 = vmatpush.bf16.msra.mxu1 %v4857_v41  ;;  %v4869_v51 = vor.u32 %v5432_v43, %v4866_v44  ;;  %v4913_v21 = vor.u32 %v5445_v17, %v4912_v16  ;;  %v4834_v36 = vld [vmem:[#allocation6 + $0x88] sm:$0xf0]  ;;  %v5441_v27 = vld [vmem:[#allocation6 + $0x104] sm:$0xf0]  ;;  %v5408_v44 = vld [vmem:[#allocation6 + $0x4] sm:$0xf] }
 0x18b   : > { %v2748_v40 = vmax.f32 %v2433_v24, 0.0  ;;  %3173 = vmatpush.bf16.msra.mxu2 %v4945_v18  ;;  %v2511_v32 = vadd.f32 %v5941_v31, %v2498_v58  ;;  %v4789_v58 = vor.u32 %v5412_v26, %v4786_v29  ;;  %v5410_v18 = vld [vmem:[#allocation6 + $0x14] sm:$0xf]  ;;  %v5469_v26 = vld [vmem:[#allocation6 + $0x1e4] sm:$0xf0] }
 0x18c   : > { %3149 = vmatpush.bf16.msrb.mxu0 %v4801_v46  ;;  %2742 = vmatpush.bf16.msra.mxu3 %v4653_v56  ;;  %v2525_v34 = vpop.f32.mrf.mxu2  ;;  %v4936_v46 = vld [vmem:[#allocation6 + $0x150] sm:$0xf]  ;;  %v4929_v56 = vor.u32 %v5449_v53, %v4928_v52  ;;  %v5448_v53 = vld [vmem:[#allocation6 + $0x144] sm:$0xf]  ;;  %v5446_v62 = vld [vmem:[#allocation6 + $0x134] sm:$0xf] }
 0x18d   : > { %v4937_v47 = vor.u32 %v5451_v3, %v4936_v46  ;;  %v5960_v48 = vpack.c.bf16 %v2748_v40, %v2748_v40  ;;  %v2524_v8 = vadd.f32 %v2523_v5, %v2511_v32  ;;  %v4920_v5 = vld [vmem:[#allocation6 + $0x130] sm:$0xf]  ;;  %v5424_v34 = vld [vmem:[#allocation6 + $0x84] sm:$0xf]  ;;  %v4778_v40 = vld [vmem:[#allocation6 + $0x18] sm:$0xf0] }
 0x18e   : > { %3164 = vmatpush.bf16.msra.mxu1 %v4849_v54  ;;  %v5418_v54 = vld [vmem:[#allocation6 + $0x54] sm:$0xf]  ;;  %v4921_v11 = vor.u32 %v5447_v7, %v4920_v5  ;;  %v4837_v4 = vor.u32 %v5424_v34, %v4834_v36  ;;  %v4781_v43 = vor.u32 %v5410_v18, %v4778_v40  ;;  %v4770_v3 = vld [vmem:[#allocation6 + $0x8] sm:$0xf0]  ;;  %v5452_v32 = vld [vmem:[#allocation6 + $0x164] sm:$0xf] }
 0x18f   : > { %2743 = vmatmul.bf16.vlgmr.msra.gmra.mxu3 %v5888_v6  ;;  %v5422_v6 = vld [vmem:[#allocation6 + $0x74] sm:$0xf]  ;;  %3174 = vmatpush.bf16.msra.mxu2 %v4937_v47  ;;  %v4946_v47 = vld [vmem:[#allocation6 + $0x168] sm:$0xf0]  ;;  %v1046_v7 = vperm.slane %v5906_v19, 2 }
 0x190   : > { %3150 = vmatpush.bf16.msrb.mxu0 %v4793_v57  ;;  %v4829_v41 = vor.u32 %v5422_v6, %v4826_v30  ;;  %v4904_v6 = vld [vmem:[#allocation6 + $0x110] sm:$0xf]  ;;  %v5443_v30 = vld [vmem:[#allocation6 + $0x114] sm:$0xf0]  ;;  %v4992_v36 = vld [vmem:[#allocation6 + $0x1c0] sm:$0xf] }
 0x191   : > { %v4905_v37 = vor.u32 %v5443_v30, %v4904_v6  ;;  %v5000_v6 = vld [vmem:[#allocation6 + $0x1d0] sm:$0xf]  ;;  %v5467_v30 = vld [vmem:[#allocation6 + $0x1d4] sm:$0xf0] }
 0x192   : > { %3165 = vmatpush.bf16.msra.mxu1 %v4841_v60  ;;  %v2536_v15 = vpop.f32.mrf.mxu3  ;;  %v4813_v60 = vor.u32 %v5418_v54, %v4810_v49  ;;  %v5450_v49 = vld [vmem:[#allocation6 + $0x154] sm:$0xf]  ;;  %v4984_v40 = vld [vmem:[#allocation6 + $0x1b0] sm:$0xf] }
 0x193   : > { %v2537_v57 = vadd.f32 %v2536_v15, %v2524_v8  ;;  %3175 = vmatpush.bf16.msra.mxu2 %v4929_v56  ;;  %v4773_v8 = vor.u32 %v5408_v44, %v4770_v3  ;;  %v4930_v15 = vld [vmem:[#allocation6 + $0x148] sm:$0xf0]  ;;  %v5461_v44 = vld [vmem:[#allocation6 + $0x1a4] sm:$0xf0] }
 0x194   : > { %3151 = vmatpush.bf16.msrb.mxu0 %v4785_v10  ;;  %v4850_v10 = vld [vmem:[#allocation6 + $0xa8] sm:$0xf0] }
 0x195   : > { %v2749_v61 = vmax.f32 %v2537_v57, 0.0  ;;  %v4853_v45 = vor.u32 %v5428_v50, %v4850_v10  ;;  %v4933_v57 = vor.u32 %v5448_v53, %v4930_v15  ;;  %v4906_v10 = vld [vmem:[#allocation6 + $0x118] sm:$0xf0]  ;;  %v5470_v15 = vld [vmem:[#allocation6 + $0x1f4] sm:$0xf] }
 0x196   : > { %3166 = vmatpush.bf16.msra.mxu1 %v4833_v13  ;;  %v5963_v31 = vpop.f32.mrf.mxu1  ;;  %v5414_v13 = vld [vmem:[#allocation6 + $0x34] sm:$0xf] }
 0x197   : > { %v2753_v9 = vpack.c.bf16 %v2749_v61, %v2749_v61  ;;  %3176 = vmatpush.bf16.msra.mxu2 %v4921_v11 }
 0x198   : > { %3152 = vmatpush.bf16.msrb.mxu0 %v4777_v23  ;;  %v5426_v23 = vld [vmem:[#allocation6 + $0x94] sm:$0xf] }
 0x199   : > { %3167 = vmatmul.bf16.vlgmr.msra.gmra.mxu1 %v2753_v9  ;;  %v4845_v35 = vor.u32 %v5426_v23, %v4842_v38 }
 0x19a   : > { %3211 = vmatpush.bf16.msrb.mxu1 %v4893_v55  ;;  %v4794_v55 = vld [vmem:[#allocation6 + $0x38] sm:$0xf0]  ;;  %v2538_v25 = vpop.f32.mrf.mxu3 }
 0x19b   : > { %v4797_v24 = vor.u32 %v5414_v13, %v4794_v55  ;;  %3177 = vmatpush.bf16.msra.mxu2 %v4913_v21  ;;  %v5440_v13 = vld [vmem:[#allocation6 + $0x104] sm:$0xf]  ;;  %v4898_v55 = vld [vmem:[#allocation6 + $0x108] sm:$0xf0]  ;;  %v5016_v21 = vld [vmem:[#allocation6 + $0x1f0] sm:$0xf] }
 0x19c   : > { %3153 = vmatpush.bf16.msrb.mxu0 %v4769_v39  ;;  %v5965_v14 = vpop.f32.mrf.mxu0  ;;  %v4901_v25 = vor.u32 %v5440_v13, %v4898_v55  ;;  %v5460_v13 = vld [vmem:[#allocation6 + $0x1a4] sm:$0xf]  ;;  %v4978_v55 = vld [vmem:[#allocation6 + $0x1a8] sm:$0xf0] }
 0x19d   : > { %v2550_v11 = vadd.f32 %v5965_v14, %v1046_v7  ;;  %v4994_v7 = vld [vmem:[#allocation6 + $0x1c8] sm:$0xf0] }
 0x19e   : > { %3212 = vmatpush.bf16.msrb.mxu1 %v4885_v33  ;;  %v2564_v22 = vpop.f32.mrf.mxu1  ;;  %v4896_v33 = vld [vmem:[#allocation6 + $0x100] sm:$0xf] }
 0x19f   : > { %3154 = vmatmul.bf16.vlgmr.msrb.gmra.mxu0 %v5960_v48  ;;  %3178 = vmatpush.bf16.msra.mxu2 %v4905_v37  ;;  %v5471_v22 = vld [vmem:[#allocation6 + $0x1f4] sm:$0xf0]  ;;  %v5465_v37 = vld [vmem:[#allocation6 + $0x1c4] sm:$0xf0] }
 0x1a0   : > { %3198 = vmatpush.bf16.msra.mxu0 %v4829_v41  ;;  %v4897_v41 = vor.u32 %v5441_v27, %v4896_v33  ;;  %v5017_v23 = vor.u32 %v5471_v22, %v5016_v21  ;;  %v5001_v33 = vor.u32 %v5467_v30, %v5000_v6 }
 0x1a2   : > { %3213 = vmatpush.bf16.msrb.mxu1 %v4877_v42  ;;  %v4954_v42 = vld [vmem:[#allocation6 + $0x178] sm:$0xf0]  ;;  %3185 = vmatpush.bf16.msrb.mxu3 %v5017_v23  ;;  %v5458_v23 = vld [vmem:[#allocation6 + $0x194] sm:$0xf] }
 0x1a3   : > { %v4957_v46 = vor.u32 %v5454_v28, %v4954_v42  ;;  %3179 = vmatpush.bf16.msra.mxu2 %v4897_v41  ;;  %v5463_v41 = vld [vmem:[#allocation6 + $0x1b4] sm:$0xf0] }
 0x1a4   : > { %3199 = vmatpush.bf16.msra.mxu0 %v4821_v63  ;;  %v5967_v20 = vpop.f32.mrf.mxu2  ;;  %v2551_v39 = vpop.f32.mrf.mxu0  ;;  %v4949_v63 = vor.u32 %v5452_v32, %v4946_v47  ;;  %v4968_v47 = vld [vmem:[#allocation6 + $0x190] sm:$0xf] }
 0x1a6   : > { %3214 = vmatpush.bf16.msrb.mxu1 %v4869_v51  ;;  %v4938_v51 = vld [vmem:[#allocation6 + $0x158] sm:$0xf0] }
 0x1a7   : > { %3224 = vmatpush.bf16.msrb.mxu2 %v4957_v46  ;;  %v4941_v52 = vor.u32 %v5450_v49, %v4938_v51  ;;  %v5457_v49 = vld [vmem:[#allocation6 + $0x184] sm:$0xf0] }
 0x1a8   : > { %3200 = vmatpush.bf16.msra.mxu0 %v4813_v60  ;;  %v4922_v60 = vld [vmem:[#allocation6 + $0x138] sm:$0xf0] }
 0x1a9   : > { %v4925_v61 = vor.u32 %v5446_v62, %v4922_v60  ;;  %v5010_v62 = vld [vmem:[#allocation6 + $0x1e8] sm:$0xf0] }
 0x1aa   : > { %3215 = vmatpush.bf16.msrb.mxu1 %v4861_v2  ;;  %v4914_v2 = vld [vmem:[#allocation6 + $0x128] sm:$0xf0] }
 0x1ab   : > { %3225 = vmatpush.bf16.msrb.mxu2 %v4949_v63  ;;  %v4917_v5 = vor.u32 %v5444_v1, %v4914_v2  ;;  %v5459_v63 = vld [vmem:[#allocation6 + $0x194] sm:$0xf0]  ;;  %v5002_v1 = vld [vmem:[#allocation6 + $0x1d8] sm:$0xf0] }
 0x1ac   : > { %3201 = vmatpush.bf16.msra.mxu0 %v4805_v12  ;;  %v2577_v54 = vpop.f32.mrf.mxu2 }
 0x1ad   : > { %v4969_v54 = vor.u32 %v5459_v63, %v4968_v47 }
 0x1ae   : > { %3216 = vmatpush.bf16.msrb.mxu1 %v4853_v45  ;;  %v2563_v45 = vadd.f32 %v5963_v31, %v2550_v11  ;;  %v4986_v11 = vld [vmem:[#allocation6 + $0x1b8] sm:$0xf0] }
 0x1af   : > { %3226 = vmatpush.bf16.msrb.mxu2 %v4941_v52 }
 0x1b0   : > { %3202 = vmatpush.bf16.msra.mxu0 %v4797_v24  ;;  %v2576_v19 = vadd.f32 %v5967_v20, %v2563_v45  ;;  %v5008_v24 = vld [vmem:[#allocation6 + $0x1e0] sm:$0xf] }
 0x1b1   : > { %v5009_v29 = vor.u32 %v5469_v26, %v5008_v24  ;;  %v5456_v26 = vld [vmem:[#allocation6 + $0x184] sm:$0xf] }
 0x1b2   : > { %3217 = vmatpush.bf16.msrb.mxu1 %v4845_v35  ;;  %v2588_v56 = vpop.f32.mrf.mxu3 }
 0x1b3   : > { %3227 = vmatpush.bf16.msrb.mxu2 %v4933_v57  ;;  %v2589_v38 = vadd.f32 %v2588_v56, %v2576_v19  ;;  %3186 = vmatpush.bf16.msrb.mxu3 %v5009_v29  ;;  %v5018_v56 = vld [vmem:[#allocation6 + $0x1f8] sm:$0xf0] }
 0x1b4   : > { %3203 = vmatpush.bf16.msra.mxu0 %v4789_v58  ;;  %v4993_v58 = vor.u32 %v5465_v37, %v4992_v36  ;;  %v5021_v57 = vor.u32 %v5470_v15, %v5018_v56  ;;  %v4970_v19 = vld [vmem:[#allocation6 + $0x198] sm:$0xf0]  ;;  %v5478_v15 = vld [vmem:[#allocation7 + $0x30] sm:$0xff] }
 0x1b5   : > { %v5486_v56 = vld [vmem:[#allocation7 + $0x70] sm:$0xff] }
 0x1b6   : > { %3218 = vmatpush.bf16.msrb.mxu1 %v4837_v4  ;;  %v2614_v59 = vpop.f32.mrf.mxu1  ;;  %v4985_v4 = vor.u32 %v5463_v41, %v4984_v40  ;;  %v2820_v41 = vld [vmem:[%s6027_s6] sm:$0x3] }
 0x1b7   : > { %3228 = vmatpush.bf16.msrb.mxu2 %v4925_v61  ;;  %3187 = vmatpush.bf16.msrb.mxu3 %v5001_v33  ;;  %v2823_v47 = vperm.slane %v2820_v41, 1 }
 0x1b8   : > { %3204 = vmatpush.bf16.msra.mxu0 %v4781_v43  ;;  %v4976_v43 = vld [vmem:[#allocation6 + $0x1a0] sm:$0xf] }
 0x1b9   : > { %3219 = vmatmul.bf16.vlgmr.msrb.gmra.mxu1 %v2753_v9  ;;  %v4977_v3 = vor.u32 %v5461_v44, %v4976_v43 }
 0x1ba   : > { %v2590_v9 = vpop.f32.mrf.mxu3 }
 0x1bb   : > { %3229 = vmatpush.bf16.msrb.mxu2 %v4917_v5  ;;  %3188 = vmatpush.bf16.msrb.mxu3 %v4993_v58  ;;  %v5464_v5 = vld [vmem:[#allocation6 + $0x1c4] sm:$0xf] }
 0x1bc   : > { %3205 = vmatpush.bf16.msra.mxu0 %v4773_v8  ;;  %v2601_v0 = vpop.f32.mrf.mxu0  ;;  %v4960_v8 = vld [vmem:[#allocation6 + $0x180] sm:$0xf]  ;;  %v4997_v9 = vor.u32 %v5464_v5, %v4994_v7  ;;  %v5473_v5 = vld [vmem:[#allocation7 + $0x8] sm:$0xff] }
 0x1bd   : > { %v2602_v35 = vadd.f32 %v2601_v0, %v2589_v38  ;;  %v4961_v52 = vor.u32 %v5457_v49, %v4960_v8  ;;  %v5466_v0 = vld [vmem:[#allocation6 + $0x1d4] sm:$0xf]  ;;  %v4973_v38 = vor.u32 %v5458_v23, %v4970_v19  ;;  %v5485_v7 = vld [vmem:[#allocation7 + $0x68] sm:$0xff] }
 0x1be   : > { %v2616_v50 = vpop.f32.mrf.mxu1  ;;  %v5005_v2 = vor.u32 %v5466_v0, %v5002_v1  ;;  %v5474_v0 = vld [vmem:[#allocation7 + $0x10] sm:$0xff] }
 0x1bf   : > { %3206 = vmatmul.bf16.vlgmr.msra.gmra.mxu0 %v5960_v48  ;;  %v5442_v48 = vld [vmem:[#allocation6 + $0x114] sm:$0xf]  ;;  %v2615_v34 = vadd.f32 %v2614_v59, %v2602_v35  ;;  %3189 = vmatpush.bf16.msrb.mxu3 %v4985_v4  ;;  %v5468_v59 = vld [vmem:[#allocation6 + $0x1e4] sm:$0xf] }
 0x1c0   : > { %v4909_v12 = vor.u32 %v5442_v48, %v4906_v10  ;;  %v5013_v60 = vor.u32 %v5468_v59, %v5010_v62  ;;  %v5462_v10 = vld [vmem:[#allocation6 + $0x1b4] sm:$0xf]  ;;  %v5476_v62 = vld [vmem:[#allocation7 + $0x20] sm:$0xff] }
 0x1c2   : > { %3230 = vmatpush.bf16.msrb.mxu2 %v4909_v12  ;;  %v4989_v12 = vor.u32 %v5462_v10, %v4986_v11  ;;  %v5482_v10 = vld [vmem:[#allocation7 + $0x50] sm:$0xff]  ;;  %v5481_v11 = vld [vmem:[#allocation7 + $0x48] sm:$0xff] }
 0x1c3   : > { %3190 = vmatpush.bf16.msrb.mxu3 %v4977_v3 }
 0x1c4   : > { %v2627_v16 = vpop.f32.mrf.mxu2  ;;  %v2603_v17 = vpop.f32.mrf.mxu0 }
 0x1c5   : > { %v2628_v31 = vadd.f32 %v2627_v16, %v2615_v34  ;;  %v4981_v17 = vor.u32 %v5460_v13, %v4978_v55  ;;  %v5495_v13 = vld [vmem:[%s6030_s9 + $0x38] sm:$0xff]  ;;  %v5494_v55 = vld [vmem:[%s6030_s9 + $0x30] sm:$0xff] }
 0x1c6   : > { %3231 = vmatpush.bf16.msrb.mxu2 %v4901_v25  ;;  %v5555_v25 = vld [vmem:[%s6025_s4] sm:$0xf] }
 0x1c7   : > { %3191 = vmatpush.bf16.msrb.mxu3 %v4969_v54  ;;  %v1047_v45 = vperm.slane %v5555_v25, 3 }
 0x1cb   : > { %3192 = vmatpush.bf16.msrb.mxu3 %v4961_v52  ;;  %v5479_v52 = vld [vmem:[#allocation7 + $0x38] sm:$0xff] }
 0x1cc   : > { %v2629_v14 = vpop.f32.mrf.mxu2  ;;  %3386 = vmatpush.bf16.msrb.mxu0 %v5479_v52 }
 0x1cd   : > { %v4962_v14 = vld [vmem:[#allocation6 + $0x188] sm:$0xf0] }
 0x1ce   : > { %v4965_v35 = vor.u32 %v5456_v26, %v4962_v14 }
 0x1cf   : > { %3237 = vmatpush.bf16.msra.mxu3 %v5021_v57  ;;  %v5477_v57 = vld [vmem:[#allocation7 + $0x28] sm:$0xff] }
 0x1d0   : > { %3387 = vmatpush.bf16.msrb.mxu0 %v5478_v15 }
 0x1d2   : > { %v2640_v27 = vpop.f32.mrf.mxu3 }
 0x1d3   : > { %v2641_v20 = vadd.f32 %v2640_v27, %v2628_v31  ;;  %3238 = vmatpush.bf16.msra.mxu3 %v5013_v60  ;;  %v5475_v60 = vld [vmem:[#allocation7 + $0x18] sm:$0xff] }
 0x1d4   : > { %3388 = vmatpush.bf16.msrb.mxu0 %v5477_v57 }
 0x1d5   : > { %v2750_v18 = vmax.f32 %v2641_v20, 0.0 }
 0x1d6   : > { %v5974_v39 = vpop.f32.mrf.mxu1 }
 0x1d7   : > { %v2754_v28 = vpack.c.bf16 %v2750_v18, %v2750_v18  ;;  %3239 = vmatpush.bf16.msra.mxu3 %v5005_v2 }
 0x1d8   : > { %3389 = vmatpush.bf16.msrb.mxu0 %v5476_v62 }
 0x1d9   : > { %3180 = vmatmul.bf16.vlgmr.msra.gmra.mxu2 %v2754_v28 }
 0x1da   : > { %v2642_v46 = vpop.f32.mrf.mxu3  ;;  %3482 = vmatpush.bf16.msra.mxu2 %v5495_v13 }
 0x1db   : > { %3240 = vmatpush.bf16.msra.mxu3 %v4997_v9  ;;  %v5472_v9 = vld [vmem:[#allocation7] sm:$0xff] }
 0x1dc   : > { %v2653_v42 = vpop.f32.mrf.mxu0  ;;  %3390 = vmatpush.bf16.msrb.mxu0 %v5475_v60 }
 0x1dd   : > { %v2654_v24 = vadd.f32 %v2653_v42, %v1047_v45  ;;  %v2822_v42 = vperm.slane %v2820_v41, 0 }
 0x1de   : > { %v2668_v32 = vpop.f32.mrf.mxu1  ;;  %3483 = vmatpush.bf16.msra.mxu2 %v5494_v55 }
 0x1df   : > { %3241 = vmatpush.bf16.msra.mxu3 %v4989_v12  ;;  %v2667_v30 = vadd.f32 %v5974_v39, %v2654_v24  ;;  %v5480_v12 = vld [vmem:[#allocation7 + $0x40] sm:$0xff] }
 0x1e0   : > { %3391 = vmatpush.bf16.msrb.mxu0 %v5474_v0 }
 0x1e3   : > { %3242 = vmatpush.bf16.msra.mxu3 %v4981_v17 }
 0x1e4   : > { %v2679_v51 = vpop.f32.mrf.mxu2  ;;  %v2655_v53 = vpop.f32.mrf.mxu0  ;;  %3392 = vmatpush.bf16.msrb.mxu0 %v5473_v5 }
 0x1e5   : > { %v2680_v33 = vadd.f32 %v2679_v51, %v2667_v30  ;;  %v5487_v53 = vld [vmem:[#allocation7 + $0x78] sm:$0xff]  ;;  %v5490_v30 = vld [vmem:[%s6030_s9 + $0x10] sm:$0xff] }
 0x1e6   : > { %3399 = vmatpush.bf16.msra.mxu1 %v5487_v53 }
 0x1e7   : > { %3243 = vmatpush.bf16.msra.mxu3 %v4973_v38 }
 0x1e8   : > { %3393 = vmatpush.bf16.msrb.mxu0 %v5472_v9 }
 0x1e9   : > { %3232 = vmatmul.bf16.vlgmr.msrb.gmra.mxu2 %v2754_v28 }
 0x1ea   : > { %3400 = vmatpush.bf16.msra.mxu1 %v5486_v56 }
 0x1eb   : > { %3244 = vmatpush.bf16.msra.mxu3 %v4965_v35  ;;  %v5492_v35 = vld [vmem:[%s6030_s9 + $0x20] sm:$0xff] }
 0x1ec   : > { %v2681_v61 = vpop.f32.mrf.mxu2 }
 0x1ee   : > { %3401 = vmatpush.bf16.msra.mxu1 %v5485_v7 }
 0x1f2   : > { %v2692_v50 = vpop.f32.mrf.mxu3 }
 0x1f3   : > { %v2693_v34 = vadd.f32 %v2692_v50, %v2680_v33  ;;  %v5484_v50 = vld [vmem:[#allocation7 + $0x60] sm:$0xff]  ;;  %v5489_v33 = vld [vmem:[%s6030_s9 + $0x8] sm:$0xff] }
 0x1f4   : > { %3402 = vmatpush.bf16.msra.mxu1 %v5484_v50 }
 0x1f6   : > { %v2718_v48 = vpop.f32.mrf.mxu1 }
 0x1fa   : > { %v2694_v21 = vpop.f32.mrf.mxu3 }
 0x1fc   : > { %v2705_v16 = vpop.f32.mrf.mxu0 }
 0x1fd   : > { %v2706_v36 = vadd.f32 %v2705_v16, %v2693_v34  ;;  %v5488_v34 = vld [vmem:[%s6030_s9] sm:$0xff] }
 0x1fe   : > { %v2720_v22 = vpop.f32.mrf.mxu1 }
 0x1ff   : > { %v2719_v37 = vadd.f32 %v2718_v48, %v2706_v36  ;;  %v5483_v48 = vld [vmem:[#allocation7 + $0x58] sm:$0xff] }
 0x200   : > { %3403 = vmatpush.bf16.msra.mxu1 %v5483_v48 }
 0x204   : > { %v2731_v29 = vpop.f32.mrf.mxu2  ;;  %v2707_v6 = vpop.f32.mrf.mxu0  ;;  %3404 = vmatpush.bf16.msra.mxu1 %v5482_v10 }
 0x205   : > { %v2732_v27 = vadd.f32 %v2731_v29, %v2719_v37  ;;  %v5493_v29 = vld [vmem:[%s6030_s9 + $0x28] sm:$0xff]  ;;  %v5491_v6 = vld [vmem:[%s6030_s9 + $0x18] sm:$0xff]  ;;  %v5553_v37 = vld [vmem:[%s6029_s8] ss:$0 sm:$0xff] }
 0x206   : > { %3484 = vmatpush.bf16.msra.mxu2 %v5493_v29 }
 0x208   : > { %3405 = vmatpush.bf16.msra.mxu1 %v5481_v11 }
 0x20a   : > { %3485 = vmatpush.bf16.msra.mxu2 %v5492_v35 }
 0x20c   : > { %v2733_v31 = vpop.f32.mrf.mxu2  ;;  %3406 = vmatpush.bf16.msra.mxu1 %v5480_v12 }
 0x20e   : > { %3486 = vmatpush.bf16.msra.mxu2 %v5491_v6 }
 0x212   : > { %v2744_v58 = vpop.f32.mrf.mxu3  ;;  %3487 = vmatpush.bf16.msra.mxu2 %v5490_v30 }
 0x213   : > { %v2745_v20 = vadd.f32 %v2744_v58, %v2732_v27 }
 0x215   : > { %v2751_v18 = vmax.f32 %v2745_v20, 0.0 }
 0x216   : > { %v3168_v43 = vpop.f32.mrf.mxu1  ;;  %3488 = vmatpush.bf16.msra.mxu2 %v5489_v33 }
 0x217   : > { %v2755_v40 = vpack.c.bf16 %v2751_v18, %v2751_v18 }
 0x219   : > { %3193 = vmatmul.bf16.vlgmr.msrb.gmra.mxu3 %v2755_v40 }
 0x21a   : > { %v2746_v28 = vpop.f32.mrf.mxu3  ;;  %3489 = vmatpush.bf16.msra.mxu2 %v5488_v34 }
 0x21c   : > { %v3155_v4 = vpop.f32.mrf.mxu0 }
 0x21d   : > { %v3156_v39 = vadd.f32 %v3155_v4, %v2822_v42  ;;  %v5554_v4 = vld [vmem:[%s6031_s10] ss:$0 sm:$0xff] }
 0x21e   : > { %v3170_v3 = vpop.f32.mrf.mxu1 }
 0x21f   : > { %v3169_v46 = vadd.f32 %v3168_v43, %v3156_v39 }
 0x224   : > { %v3157_v44 = vpop.f32.mrf.mxu0 }
 0x229   : > { %3245 = vmatmul.bf16.vlgmr.msra.gmra.mxu3 %v2755_v40 }
 0x236   : > { %v3220_v32 = vpop.f32.mrf.mxu1 }
 0x23c   : > { %v3207_v63 = vpop.f32.mrf.mxu0 }
 0x23d   : > { %v3208_v54 = vadd.f32 %v3207_v63, %v2823_v47 }
 0x23e   : > { %v3222_v8 = vpop.f32.mrf.mxu1 }
 0x23f   : > { %v3221_v49 = vadd.f32 %v3220_v32, %v3208_v54 }
 0x244   : > { %v3209_v51 = vpop.f32.mrf.mxu0 }
 0x25c   : > { %v3181_v59 = vpop.f32.mrf.mxu2 }
 0x25d   : > { %v3182_v16 = vadd.f32 %v3181_v59, %v3169_v46 }
 0x264   : > { %v3183_v61 = vpop.f32.mrf.mxu2 }
 0x26c   : > { %v3233_v1 = vpop.f32.mrf.mxu2 }
 0x26d   : > { %v3234_v23 = vadd.f32 %v3233_v1, %v3221_v49 }
 0x274   : > { %v3235_v2 = vpop.f32.mrf.mxu2 }
 0x29c   : > { %v3194_v17 = vpop.f32.mrf.mxu3 }
 0x29d   : > { %v3195_v25 = vadd.f32 %v3194_v17, %v3182_v16 }
 0x29f   : > { %v3250_v45 = vmax.f32 %v3195_v25, 0.0 }
 0x2a1   : > { %v3252_v21 = vpack.c.bf16 %v3250_v45, %v3250_v45 }
 0x2a3   : > { %3394 = vmatmul.bf16.vlgmr.msrb.gmra.mxu0 %v3252_v21 }
 0x2a4   : > { %v3196_v22 = vpop.f32.mrf.mxu3 }
 0x2ac   : > { %v3246_v19 = vpop.f32.mrf.mxu3 }
 0x2ad   : > { %v3247_v38 = vadd.f32 %v3246_v19, %v3234_v23 }
 0x2af   : > { %v3251_v24 = vmax.f32 %v3247_v38, 0.0 }
 0x2b1   : > { %v3253_v26 = vpack.c.bf16 %v3251_v24, %v3251_v24 }
 0x2b3   : > { %3407 = vmatmul.bf16.vlgmr.msra.gmra.mxu1 %v3253_v26 }
 0x2b4   : > { %v3248_v14 = vpop.f32.mrf.mxu3 }
 0x320   : > { %v3395_v31 = vpop.f32.mrf.mxu0 }
 0x321   : > { %v3396_v27 = vadd.f32 %v5553_v37, %v3395_v31 }
 0x328   : > { %v3397_v36 = vpop.f32.mrf.mxu0 }
 0x330   : > { %v3408_v58 = vpop.f32.mrf.mxu1 }
 0x331   : > { %v3409_v20 = vadd.f32 %v3408_v58, %v3396_v27 }
 0x333   : > { %v3412_v18 = vmax.f32 %v3409_v20, 0.0 }
 0x335   : > { %v3413_v40 = vpack.c.bf16 %v3412_v18, %v3412_v18 }
 0x337   : > { %3490 = vmatmul.bf16.vlgmr.msra.gmra.mxu2 %v3413_v40 }
 0x338   : > { %v3410_v41 = vpop.f32.mrf.mxu1 }
 0x3ba   : > { %v3491_v28 = vpop.f32.mrf.mxu2 }
 0x3bb   : > { %v3492_v42 = vadd.f32 %v5554_v4, %v3491_v28 }
 0x3bd   : > { %3496 = vst.msk [vmem:[%s448_s12] sm:$0xff] %vm3495_vm1, %v3492_v42 }
 0x3c2   : > { %v3493_v39 = vpop.f32.mrf.mxu2 }
 0x3c3 PF: > { %s24_s17 = sadd.s32 1, %s5694_s17  }
 0x3c4   : > { %p21_p7 = scmp.ge.s32.totalorder %s24_s17, 4  }
 0x3c6   :  { %23 = sbr.rel (!%p21_p7) target bundleno = 6 (0x6), region = 111 }
 0x3cb   :  { %3516 = vsyncpa [#allocation3], 1 }
 0x3cc   :  { %3518 = vsyncpa [#allocation3 + $0x1], 1 }
 0x3cd   :  { %3519 = vsyncpa [#allocation5], 1 }
 0x3ce   :  { %3520 = vsyncpa [#allocation8], 1 }

</bundles_post_ra>
